<compile_context>
chip_gen: v7x
topology: tpu7x:2x2x1
jax: 0.10.0
libtpu: 0.0.40
codegen_flags: <defaults>
</compile_context>

<pallas_src>
import functools

import jax
import jax.numpy as jnp
from jax.experimental import pallas as pl
from jax.experimental.pallas import tpu as pltpu

BN_EPS = 1e-5
CPAD = 128              # lane-dense channel padding
L_IN, C_IN = 56, 40     # Linear(64*7) after three /2 pools  ->  input length 56
MAX_VMEM_BATCH = 256    # conservative whole-batch-in-VMEM ceiling (v7x: 64 MiB physical)

_VMEM = pl.BlockSpec(memory_space=pltpu.MemorySpace.VMEM)


# --------------------------------------------------------------------------- #
# In-kernel helpers (slabs are TIME-MAJOR: row r = t*B + b)
# --------------------------------------------------------------------------- #
def _im2col(h, B):
    """[h[t-1], h[t], h[t+1]] along lanes for a time-major (L*B, 128) bf16 slab.

    One time step is a sublane-aligned shift by B rows (B % 8 == 0); the zero rows
    concatenated at either end realize Conv1d's zero padding, so no masks are needed.
    """
    zeros = jnp.zeros((B, h.shape[1]), h.dtype)
    h_prev = jnp.concatenate([zeros, h[:-B, :]], axis=0)     # row r <- r - B   (t-1)
    h_next = jnp.concatenate([h[B:, :], zeros], axis=0)      # row r <- r + B   (t+1)
    return jnp.concatenate([h_prev, h, h_next], axis=1)      # (L*B, 384)


def _bn_relu_pool(y, B, g, bt):
    """Training-mode BatchNorm1d (two-pass batch stats, biased var) + ReLU + MaxPool1d(2).

    y: (L*B, 128) f32, time-major.  Returns (L//2*B, 128) bf16 (next matmul operand).
    """
    R, C = y.shape
    inv_n = 1.0 / R
    mean = jnp.sum(y, axis=0, keepdims=True) * inv_n
    yc = y - mean                                           # conv bias cancels here
    var = jnp.sum(yc * yc, axis=0, keepdims=True) * inv_n
    y = jnp.maximum(yc * (jax.lax.rsqrt(var + BN_EPS) * g) + bt, 0.0)
    # MaxPool1d(2): in time-major order the pooling partners are adjacent B-row blocks.
    y = y.reshape(R // (2 * B), 2 * B, C)
    y = jnp.maximum(y[:, :B, :], y[:, B:, :])
    return y.reshape(R // 2, C).astype(jnp.bfloat16)


def audio_feature_kernel(x_ref,
                         w1_ref, g1_ref, bt1_ref,
                         w2_ref, g2_ref, bt2_ref,
                         w3_ref, g3_ref, bt3_ref,
                         wf1_ref, bf1_ref, wf2_ref, bf2_ref,
                         o_ref, *, batch):
    B = batch

    # conv1: im2col was done in the wrapper -> one plain (56B,128)x(128,128) MXU dot.
    y = jnp.dot(x_ref[...], w1_ref[...], preferred_element_type=jnp.float32)
    h = _bn_relu_pool(y, B, g1_ref[...], bt1_ref[...])                   # (28B, 128)

    # conv2 / conv3: in-kernel im2col (shift-by-B) + one deep-K MXU dot each.
    y = jnp.dot(_im2col(h, B), w2_ref[...], preferred_element_type=jnp.float32)
    h = _bn_relu_pool(y, B, g2_ref[...], bt2_ref[...])                   # (14B, 128)

    y = jnp.dot(_im2col(h, B), w3_ref[...], preferred_element_type=jnp.float32)
    h = _bn_relu_pool(y, B, g3_ref[...], bt3_ref[...])                   # (7B, 128)

    # fc1: time-major order makes tap t the contiguous rows [t*B, (t+1)*B); the lane
    # concat at 128-lane offsets is layout-only, then ONE deep-K (B,896)x(896,128) dot.
    hcat = jnp.concatenate([h[t * B:(t + 1) * B, :] for t in range(7)], axis=1)
    z = jnp.dot(hcat, wf1_ref[...], preferred_element_type=jnp.float32) + bf1_ref[...]
    z = jnp.maximum(z, 0.0).astype(jnp.bfloat16)

    # fc2 (output padded to 128 lanes -> unmasked store; wrapper slices back to 32).
    o_ref[...] = jnp.dot(z, wf2_ref[...],
                         preferred_element_type=jnp.float32) + bf2_ref[...]


# --------------------------------------------------------------------------- #
# Wrapper / parameter packing (pure layout glue, runs in XLA)
# --------------------------------------------------------------------------- #
def audio_feature_net(x_ncl, packed_params):
    """x_ncl: (B, 40, 56) float32 in PyTorch NCL layout.  Returns (B, 32) float32."""
    B = x_ncl.shape[0]
    assert B % 8 == 0, "batch must be a multiple of 8 (sublane-aligned time-major slabs)"
    assert B <= MAX_VMEM_BATCH, "whole-batch VMEM-resident kernel; pipeline beyond this"

    # Wrapper-side conv1 im2col (40 real channels -> 3*40 = 120 lanes, pad to 128),
    # laid out time-major so every later shift / tap slice is sublane-aligned.
    x = jnp.transpose(x_ncl, (0, 2, 1))                                   # (B, 56, 40)
    xp = jnp.pad(x, ((0, 0), (1, 1), (0, 0)))                             # (B, 58, 40)
    x = jnp.concatenate([xp[:, 0:L_IN, :], xp[:, 1:L_IN + 1, :],
                         xp[:, 2:L_IN + 2, :]], axis=-1)                  # (B, 56, 120)
    x = jnp.transpose(x, (1, 0, 2)).reshape(L_IN * B, 3 * C_IN)           # row = t*B + b
    x = jnp.pad(x, ((0, 0), (0, CPAD - 3 * C_IN))).astype(jnp.bfloat16)   # (56B, 128)

    kernel = functools.partial(audio_feature_kernel, batch=B)
    args = (x,) + tuple(packed_params)
    # Whole-batch VMEM residency (training-mode BN couples the batch): scale the scoped
    # VMEM budget with B, capped at the smallest physical VMEM across targets (v7x 64 MiB).
    vmem_bytes = int(min(64 * 2**20, 16 * 2**20 + B * 192 * 1024))
    out = pl.pallas_call(
        kernel,
        out_shape=jax.ShapeDtypeStruct((B, CPAD), jnp.float32),
        in_specs=[_VMEM] * len(args),
        out_specs=_VMEM,
        compiler_params=pltpu.CompilerParams(vmem_limit_bytes=vmem_bytes),
    )(*args)
    return out[:, :32]


def _pad_axis(a, size, axis):
    pad = [(0, 0)] * a.ndim
    pad[axis] = (0, size - a.shape[axis])
    return jnp.pad(a, pad)


def pack_params(p):
    """PyTorch-layout params -> lane-dense bf16 matmul weights + f32 BN/bias rows.

    Conv biases b1/b2/b3 are intentionally NOT packed: a bias added right before
    training-mode BatchNorm is cancelled exactly by the batch-mean subtraction.
    """
    bf16 = jnp.bfloat16

    def vec(v):                                             # (C,) -> (1, 128) f32
        return _pad_axis(v.reshape(1, -1).astype(jnp.float32), CPAD, 1)

    # conv1: fused with the wrapper-side im2col; lane index = k*40 + c  -> (128, 128).
    w1 = jnp.transpose(p["w1"], (2, 1, 0)).reshape(3 * C_IN, 64)          # (120, 64)
    w1 = _pad_axis(_pad_axis(w1, CPAD, 0), CPAD, 1).astype(bf16)

    def conv_w(w_pt):                                       # (Cout, Cin, 3) -> (384, 128)
        w = jnp.transpose(w_pt, (2, 1, 0))                  # (3, Cin, Cout); k=0 <-> x[t-1]
        w = _pad_axis(_pad_axis(w, CPAD, 1), CPAD, 2)       # (3, 128, 128)
        return w.reshape(3 * CPAD, CPAD).astype(bf16)

    # fc1: PyTorch weight (128, 448) acts on a channel-major (C=64, T=7) flatten; the
    # kernel's hcat is tap-major (lane = t*128 + c), so reorder to (7, 64, 128), pad the
    # channel axis and flatten to (896, 128).
    wf1 = jnp.transpose(p["wf1"].reshape(128, 64, 7), (2, 1, 0))           # (7, 64, 128)
    wf1 = _pad_axis(wf1, CPAD, 1).reshape(7 * CPAD, CPAD).astype(bf16)
    wf2 = _pad_axis(p["wf2"].T, CPAD, 1).astype(bf16)                      # (128, 128)

    return (w1, vec(p["g1"]), vec(p["bt1"]),
            conv_w(p["w2"]), vec(p["g2"]), vec(p["bt2"]),
            conv_w(p["w3"]), vec(p["g3"]), vec(p["bt3"]),
            wf1, vec(p["bf1"]), wf2, vec(p["bf2"]))


def init_params(key):
    """Parameters in PyTorch layout (as nn.Conv1d / nn.BatchNorm1d / nn.Linear store them)."""
    ks = jax.random.split(key, 16)

    def w(k, shape, scale=0.05):
        return (scale * jax.random.normal(k, shape)).astype(jnp.float32)

    return dict(
        w1=w(ks[0], (64, 40, 3)),    b1=w(ks[1], (64,)),
        w2=w(ks[2], (128, 64, 3)),   b2=w(ks[3], (128,)),
        w3=w(ks[4], (64, 128, 3)),   b3=w(ks[5], (64,)),
        # BN affine randomized (instead of PyTorch's 1/0 init) so the affine path is
        # genuinely exercised by the correctness check.
        g1=1.0 + w(ks[6], (64,), 0.1),   bt1=w(ks[7], (64,), 0.1),
        g2=1.0 + w(ks[8], (128,), 0.1),  bt2=w(ks[9], (128,), 0.1),
        g3=1.0 + w(ks[10], (64,), 0.1),  bt3=w(ks[11], (64,), 0.1),
        wf1=w(ks[12], (128, 448)),   bf1=w(ks[13], (128,)),
        wf2=w(ks[14], (32, 128)),    bf2=w(ks[15], (32,)),
    )


def _reference(x_ncl, p, matmul_dtype):
    """Pure-JAX forward with the PyTorch module's exact (training-mode) semantics.

    matmul_dtype=float32 reproduces the f32 forward; bfloat16 mirrors the kernel's
    bf16-operand / f32-accumulate MXU arithmetic for a tight correctness check.
    """
    x = jnp.transpose(x_ncl, (0, 2, 1))                                   # (B, L, C)

    def block(x, w_pt, b, g, bt):
        B, L, _ = x.shape
        w = jnp.transpose(w_pt, (2, 1, 0)).astype(matmul_dtype)           # (3, Cin, Cout)
        xp = jnp.pad(x, ((0, 0), (1, 1), (0, 0))).astype(matmul_dtype)
        y = sum(jnp.einsum("blc,cd->bld", xp[:, k:k + L, :], w[k],
                           preferred_element_type=jnp.float32)
                for k in range(3)) + b
        mean = jnp.mean(y, axis=(0, 1), keepdims=True)
        var = jnp.mean((y - mean) ** 2, axis=(0, 1), keepdims=True)
        y = jnp.maximum((y - mean) * jax.lax.rsqrt(var + BN_EPS) * g + bt, 0.0)
        return jnp.max(y.reshape(B, L // 2, 2, y.shape[-1]), axis=2)

    h = block(x, p["w1"], p["b1"], p["g1"], p["bt1"])
    h = block(h, p["w2"], p["b2"], p["g2"], p["bt2"])
    h = block(h, p["w3"], p["b3"], p["g3"], p["bt3"])
    # PyTorch view(B, -1) on a (B, C, T) conv output: channel-major flatten.
    flat = jnp.transpose(h, (0, 2, 1)).reshape(h.shape[0], -1)            # (B, 448)
    z = jnp.dot(flat.astype(matmul_dtype), p["wf1"].T.astype(matmul_dtype),
                preferred_element_type=jnp.float32) + p["bf1"]
    z = jnp.maximum(z, 0.0)
    return jnp.dot(z.astype(matmul_dtype), p["wf2"].T.astype(matmul_dtype),
                   preferred_element_type=jnp.float32) + p["bf2"]


if __name__ == "__main__":
    key = jax.random.PRNGKey(0)
    kx, kp = jax.random.split(key)
    B = 8  # multiple of 8 keeps every time-major slab sublane-aligned
    x_ncl = jax.random.normal(kx, (B, C_IN, L_IN), jnp.float32)           # PyTorch NCL
    params = init_params(kp)

    out = audio_feature_net(x_ncl, pack_params(params))
    out = jax.block_until_ready(out)
    assert out.shape == (B, 32), out.shape

    # Tight check vs. a pure-JAX mirror of the kernel's bf16-operand MXU arithmetic.
    ref_bf16 = _reference(x_ncl, params, jnp.bfloat16)
    err_bf16 = float(jnp.max(jnp.abs(out - ref_bf16)))
    assert jnp.allclose(out, ref_bf16, rtol=1e-2, atol=1e-2), err_bf16

    # Sanity bound vs. the exact f32 forward (bf16 operands give ~1e-2-level deviation;
    # BN re-normalization keeps the error growth contained).
    ref_f32 = _reference(x_ncl, params, jnp.float32)
    err_f32 = float(jnp.max(jnp.abs(out - ref_f32)))
    assert jnp.allclose(out, ref_f32, rtol=7e-2, atol=7e-2), err_f32

    print("KERNEL_OK")
</pallas_src>

<mosaic_0001>
module attributes {stable_mosaic.version = 11 : i64} {
  func.func @audio_feature_kernel(%arg0: memref<448x128xbf16, #tpu.memory_space<vmem>>, %arg1: memref<128x128xbf16, #tpu.memory_space<vmem>>, %arg2: memref<1x128xf32, #tpu.memory_space<vmem>>, %arg3: memref<1x128xf32, #tpu.memory_space<vmem>>, %arg4: memref<384x128xbf16, #tpu.memory_space<vmem>>, %arg5: memref<1x128xf32, #tpu.memory_space<vmem>>, %arg6: memref<1x128xf32, #tpu.memory_space<vmem>>, %arg7: memref<384x128xbf16, #tpu.memory_space<vmem>>, %arg8: memref<1x128xf32, #tpu.memory_space<vmem>>, %arg9: memref<1x128xf32, #tpu.memory_space<vmem>>, %arg10: memref<896x128xbf16, #tpu.memory_space<vmem>>, %arg11: memref<1x128xf32, #tpu.memory_space<vmem>>, %arg12: memref<128x128xbf16, #tpu.memory_space<vmem>>, %arg13: memref<1x128xf32, #tpu.memory_space<vmem>>, %arg14: memref<8x128xf32, #tpu.memory_space<vmem>>) attributes {dimension_semantics = [], scalar_prefetch = 0 : i64, scratch_operands = 0 : i64, tpu.core_type = #tpu.core_type<tc>} {
    %c0 = arith.constant 0 : index
    %c0_0 = arith.constant 0 : index
    %0 = vector.load %arg0[%c0, %c0_0] : memref<448x128xbf16, #tpu.memory_space<vmem>>, vector<448x128xbf16>
    %c0_1 = arith.constant 0 : index
    %c0_2 = arith.constant 0 : index
    %1 = vector.load %arg1[%c0_1, %c0_2] : memref<128x128xbf16, #tpu.memory_space<vmem>>, vector<128x128xbf16>
    %cst = arith.constant dense<0.000000e+00> : vector<448x128xf32>
    %2 = tpu.matmul %0, %1, %cst {dimension_numbers = #tpu.dot_dimension_numbers<[1], [0], [0], [1], [0, 0, 1, 1], [], []>} : vector<448x128xbf16>, vector<128x128xbf16>, vector<448x128xf32> -> vector<448x128xf32>
    %c0_3 = arith.constant 0 : index
    %c0_4 = arith.constant 0 : index
    %3 = vector.load %arg2[%c0_3, %c0_4] : memref<1x128xf32, #tpu.memory_space<vmem>>, vector<1x128xf32>
    %c0_5 = arith.constant 0 : index
    %c0_6 = arith.constant 0 : index
    %4 = vector.load %arg3[%c0_5, %c0_6] : memref<1x128xf32, #tpu.memory_space<vmem>>, vector<1x128xf32>
    %cst_7 = arith.constant dense<0.000000e+00> : vector<128xf32>
    %5 = vector.multi_reduction <add>, %2, %cst_7 [0] : vector<448x128xf32> to vector<128xf32>
    %6 = vector.shape_cast %5 : vector<128xf32> to vector<1x128xf32>
    %cst_8 = arith.constant 0.00223214296 : f32
    %7 = vector.broadcast %cst_8 : f32 to vector<1x128xf32>
    %8 = arith.mulf %6, %7 : vector<1x128xf32>
    %9 = vector.broadcast %8 : vector<1x128xf32> to vector<448x128xf32>
    %10 = arith.subf %2, %9 : vector<448x128xf32>
    %11 = arith.mulf %10, %10 : vector<448x128xf32>
    %cst_9 = arith.constant dense<0.000000e+00> : vector<128xf32>
    %12 = vector.multi_reduction <add>, %11, %cst_9 [0] : vector<448x128xf32> to vector<128xf32>
    %13 = vector.shape_cast %12 : vector<128xf32> to vector<1x128xf32>
    %cst_10 = arith.constant 0.00223214296 : f32
    %14 = vector.broadcast %cst_10 : f32 to vector<1x128xf32>
    %15 = arith.mulf %13, %14 : vector<1x128xf32>
    %cst_11 = arith.constant 9.99999974E-6 : f32
    %16 = vector.broadcast %cst_11 : f32 to vector<1x128xf32>
    %17 = arith.addf %15, %16 : vector<1x128xf32>
    %18 = math.rsqrt %17 : vector<1x128xf32>
    %19 = arith.mulf %18, %3 : vector<1x128xf32>
    %20 = vector.broadcast %19 : vector<1x128xf32> to vector<448x128xf32>
    %21 = arith.mulf %10, %20 : vector<448x128xf32>
    %22 = vector.broadcast %4 : vector<1x128xf32> to vector<448x128xf32>
    %23 = arith.addf %21, %22 : vector<448x128xf32>
    %cst_12 = arith.constant 0.000000e+00 : f32
    %24 = vector.broadcast %cst_12 : f32 to vector<448x128xf32>
    %25 = arith.maximumf %23, %24 : vector<448x128xf32>
    %26 = vector.shape_cast %25 : vector<448x128xf32> to vector<28x16x128xf32>
    %27 = vector.extract_strided_slice %26 {offsets = [0, 0, 0], sizes = [28, 8, 128], strides = [1, 1, 1]} : vector<28x16x128xf32> to vector<28x8x128xf32>
    %28 = vector.extract_strided_slice %26 {offsets = [0, 8, 0], sizes = [28, 8, 128], strides = [1, 1, 1]} : vector<28x16x128xf32> to vector<28x8x128xf32>
    %29 = arith.maximumf %27, %28 : vector<28x8x128xf32>
    %30 = vector.shape_cast %29 : vector<28x8x128xf32> to vector<224x128xf32>
    %31 = arith.truncf %30 : vector<224x128xf32> to vector<224x128xbf16>
    %cst_13 = arith.constant 0.000000e+00 : bf16
    %32 = vector.broadcast %cst_13 : bf16 to vector<8x128xbf16>
    %33 = vector.extract_strided_slice %31 {offsets = [0, 0], sizes = [216, 128], strides = [1, 1]} : vector<224x128xbf16> to vector<216x128xbf16>
    %34 = tpu.concatenate %32, %33 in 0 : vector<8x128xbf16>, vector<216x128xbf16> -> vector<224x128xbf16>
    %35 = vector.extract_strided_slice %31 {offsets = [8, 0], sizes = [216, 128], strides = [1, 1]} : vector<224x128xbf16> to vector<216x128xbf16>
    %36 = tpu.concatenate %35, %32 in 0 : vector<216x128xbf16>, vector<8x128xbf16> -> vector<224x128xbf16>
    %37 = tpu.concatenate %34, %31, %36 in 1 : vector<224x128xbf16>, vector<224x128xbf16>, vector<224x128xbf16> -> vector<224x384xbf16>
    %c0_14 = arith.constant 0 : index
    %c0_15 = arith.constant 0 : index
    %38 = vector.load %arg4[%c0_14, %c0_15] : memref<384x128xbf16, #tpu.memory_space<vmem>>, vector<384x128xbf16>
    %cst_16 = arith.constant dense<0.000000e+00> : vector<224x128xf32>
    %39 = tpu.matmul %37, %38, %cst_16 {dimension_numbers = #tpu.dot_dimension_numbers<[1], [0], [0], [1], [0, 0, 1, 1], [], []>} : vector<224x384xbf16>, vector<384x128xbf16>, vector<224x128xf32> -> vector<224x128xf32>
    %c0_17 = arith.constant 0 : index
    %c0_18 = arith.constant 0 : index
    %40 = vector.load %arg5[%c0_17, %c0_18] : memref<1x128xf32, #tpu.memory_space<vmem>>, vector<1x128xf32>
    %c0_19 = arith.constant 0 : index
    %c0_20 = arith.constant 0 : index
    %41 = vector.load %arg6[%c0_19, %c0_20] : memref<1x128xf32, #tpu.memory_space<vmem>>, vector<1x128xf32>
    %cst_21 = arith.constant dense<0.000000e+00> : vector<128xf32>
    %42 = vector.multi_reduction <add>, %39, %cst_21 [0] : vector<224x128xf32> to vector<128xf32>
    %43 = vector.shape_cast %42 : vector<128xf32> to vector<1x128xf32>
    %cst_22 = arith.constant 0.00446428591 : f32
    %44 = vector.broadcast %cst_22 : f32 to vector<1x128xf32>
    %45 = arith.mulf %43, %44 : vector<1x128xf32>
    %46 = vector.broadcast %45 : vector<1x128xf32> to vector<224x128xf32>
    %47 = arith.subf %39, %46 : vector<224x128xf32>
    %48 = arith.mulf %47, %47 : vector<224x128xf32>
    %cst_23 = arith.constant dense<0.000000e+00> : vector<128xf32>
    %49 = vector.multi_reduction <add>, %48, %cst_23 [0] : vector<224x128xf32> to vector<128xf32>
    %50 = vector.shape_cast %49 : vector<128xf32> to vector<1x128xf32>
    %cst_24 = arith.constant 0.00446428591 : f32
    %51 = vector.broadcast %cst_24 : f32 to vector<1x128xf32>
    %52 = arith.mulf %50, %51 : vector<1x128xf32>
    %cst_25 = arith.constant 9.99999974E-6 : f32
    %53 = vector.broadcast %cst_25 : f32 to vector<1x128xf32>
    %54 = arith.addf %52, %53 : vector<1x128xf32>
    %55 = math.rsqrt %54 : vector<1x128xf32>
    %56 = arith.mulf %55, %40 : vector<1x128xf32>
    %57 = vector.broadcast %56 : vector<1x128xf32> to vector<224x128xf32>
    %58 = arith.mulf %47, %57 : vector<224x128xf32>
    %59 = vector.broadcast %41 : vector<1x128xf32> to vector<224x128xf32>
    %60 = arith.addf %58, %59 : vector<224x128xf32>
    %cst_26 = arith.constant 0.000000e+00 : f32
    %61 = vector.broadcast %cst_26 : f32 to vector<224x128xf32>
    %62 = arith.maximumf %60, %61 : vector<224x128xf32>
    %63 = vector.shape_cast %62 : vector<224x128xf32> to vector<14x16x128xf32>
    %64 = vector.extract_strided_slice %63 {offsets = [0, 0, 0], sizes = [14, 8, 128], strides = [1, 1, 1]} : vector<14x16x128xf32> to vector<14x8x128xf32>
    %65 = vector.extract_strided_slice %63 {offsets = [0, 8, 0], sizes = [14, 8, 128], strides = [1, 1, 1]} : vector<14x16x128xf32> to vector<14x8x128xf32>
    %66 = arith.maximumf %64, %65 : vector<14x8x128xf32>
    %67 = vector.shape_cast %66 : vector<14x8x128xf32> to vector<112x128xf32>
    %68 = arith.truncf %67 : vector<112x128xf32> to vector<112x128xbf16>
    %cst_27 = arith.constant 0.000000e+00 : bf16
    %69 = vector.broadcast %cst_27 : bf16 to vector<8x128xbf16>
    %70 = vector.extract_strided_slice %68 {offsets = [0, 0], sizes = [104, 128], strides = [1, 1]} : vector<112x128xbf16> to vector<104x128xbf16>
    %71 = tpu.concatenate %69, %70 in 0 : vector<8x128xbf16>, vector<104x128xbf16> -> vector<112x128xbf16>
    %72 = vector.extract_strided_slice %68 {offsets = [8, 0], sizes = [104, 128], strides = [1, 1]} : vector<112x128xbf16> to vector<104x128xbf16>
    %73 = tpu.concatenate %72, %69 in 0 : vector<104x128xbf16>, vector<8x128xbf16> -> vector<112x128xbf16>
    %74 = tpu.concatenate %71, %68, %73 in 1 : vector<112x128xbf16>, vector<112x128xbf16>, vector<112x128xbf16> -> vector<112x384xbf16>
    %c0_28 = arith.constant 0 : index
    %c0_29 = arith.constant 0 : index
    %75 = vector.load %arg7[%c0_28, %c0_29] : memref<384x128xbf16, #tpu.memory_space<vmem>>, vector<384x128xbf16>
    %cst_30 = arith.constant dense<0.000000e+00> : vector<112x128xf32>
    %76 = tpu.matmul %74, %75, %cst_30 {dimension_numbers = #tpu.dot_dimension_numbers<[1], [0], [0], [1], [0, 0, 1, 1], [], []>} : vector<112x384xbf16>, vector<384x128xbf16>, vector<112x128xf32> -> vector<112x128xf32>
    %c0_31 = arith.constant 0 : index
    %c0_32 = arith.constant 0 : index
    %77 = vector.load %arg8[%c0_31, %c0_32] : memref<1x128xf32, #tpu.memory_space<vmem>>, vector<1x128xf32>
    %c0_33 = arith.constant 0 : index
    %c0_34 = arith.constant 0 : index
    %78 = vector.load %arg9[%c0_33, %c0_34] : memref<1x128xf32, #tpu.memory_space<vmem>>, vector<1x128xf32>
    %cst_35 = arith.constant dense<0.000000e+00> : vector<128xf32>
    %79 = vector.multi_reduction <add>, %76, %cst_35 [0] : vector<112x128xf32> to vector<128xf32>
    %80 = vector.shape_cast %79 : vector<128xf32> to vector<1x128xf32>
    %cst_36 = arith.constant 0.00892857183 : f32
    %81 = vector.broadcast %cst_36 : f32 to vector<1x128xf32>
    %82 = arith.mulf %80, %81 : vector<1x128xf32>
    %83 = vector.broadcast %82 : vector<1x128xf32> to vector<112x128xf32>
    %84 = arith.subf %76, %83 : vector<112x128xf32>
    %85 = arith.mulf %84, %84 : vector<112x128xf32>
    %cst_37 = arith.constant dense<0.000000e+00> : vector<128xf32>
    %86 = vector.multi_reduction <add>, %85, %cst_37 [0] : vector<112x128xf32> to vector<128xf32>
    %87 = vector.shape_cast %86 : vector<128xf32> to vector<1x128xf32>
    %cst_38 = arith.constant 0.00892857183 : f32
    %88 = vector.broadcast %cst_38 : f32 to vector<1x128xf32>
    %89 = arith.mulf %87, %88 : vector<1x128xf32>
    %cst_39 = arith.constant 9.99999974E-6 : f32
    %90 = vector.broadcast %cst_39 : f32 to vector<1x128xf32>
    %91 = arith.addf %89, %90 : vector<1x128xf32>
    %92 = math.rsqrt %91 : vector<1x128xf32>
    %93 = arith.mulf %92, %77 : vector<1x128xf32>
    %94 = vector.broadcast %93 : vector<1x128xf32> to vector<112x128xf32>
    %95 = arith.mulf %84, %94 : vector<112x128xf32>
    %96 = vector.broadcast %78 : vector<1x128xf32> to vector<112x128xf32>
    %97 = arith.addf %95, %96 : vector<112x128xf32>
    %cst_40 = arith.constant 0.000000e+00 : f32
    %98 = vector.broadcast %cst_40 : f32 to vector<112x128xf32>
    %99 = arith.maximumf %97, %98 : vector<112x128xf32>
    %100 = vector.shape_cast %99 : vector<112x128xf32> to vector<7x16x128xf32>
    %101 = vector.extract_strided_slice %100 {offsets = [0, 0, 0], sizes = [7, 8, 128], strides = [1, 1, 1]} : vector<7x16x128xf32> to vector<7x8x128xf32>
    %102 = vector.extract_strided_slice %100 {offsets = [0, 8, 0], sizes = [7, 8, 128], strides = [1, 1, 1]} : vector<7x16x128xf32> to vector<7x8x128xf32>
    %103 = arith.maximumf %101, %102 : vector<7x8x128xf32>
    %104 = vector.shape_cast %103 : vector<7x8x128xf32> to vector<56x128xf32>
    %105 = arith.truncf %104 : vector<56x128xf32> to vector<56x128xbf16>
    %106 = vector.extract_strided_slice %105 {offsets = [0, 0], sizes = [8, 128], strides = [1, 1]} : vector<56x128xbf16> to vector<8x128xbf16>
    %107 = vector.extract_strided_slice %105 {offsets = [8, 0], sizes = [8, 128], strides = [1, 1]} : vector<56x128xbf16> to vector<8x128xbf16>
    %108 = vector.extract_strided_slice %105 {offsets = [16, 0], sizes = [8, 128], strides = [1, 1]} : vector<56x128xbf16> to vector<8x128xbf16>
    %109 = vector.extract_strided_slice %105 {offsets = [24, 0], sizes = [8, 128], strides = [1, 1]} : vector<56x128xbf16> to vector<8x128xbf16>
    %110 = vector.extract_strided_slice %105 {offsets = [32, 0], sizes = [8, 128], strides = [1, 1]} : vector<56x128xbf16> to vector<8x128xbf16>
    %111 = vector.extract_strided_slice %105 {offsets = [40, 0], sizes = [8, 128], strides = [1, 1]} : vector<56x128xbf16> to vector<8x128xbf16>
    %112 = vector.extract_strided_slice %105 {offsets = [48, 0], sizes = [8, 128], strides = [1, 1]} : vector<56x128xbf16> to vector<8x128xbf16>
    %113 = tpu.concatenate %106, %107, %108, %109, %110, %111, %112 in 1 : vector<8x128xbf16>, vector<8x128xbf16>, vector<8x128xbf16>, vector<8x128xbf16>, vector<8x128xbf16>, vector<8x128xbf16>, vector<8x128xbf16> -> vector<8x896xbf16>
    %c0_41 = arith.constant 0 : index
    %c0_42 = arith.constant 0 : index
    %114 = vector.load %arg10[%c0_41, %c0_42] : memref<896x128xbf16, #tpu.memory_space<vmem>>, vector<896x128xbf16>
    %cst_43 = arith.constant dense<0.000000e+00> : vector<8x128xf32>
    %115 = tpu.matmul %113, %114, %cst_43 {dimension_numbers = #tpu.dot_dimension_numbers<[1], [0], [0], [1], [0, 0, 1, 1], [], []>} : vector<8x896xbf16>, vector<896x128xbf16>, vector<8x128xf32> -> vector<8x128xf32>
    %c0_44 = arith.constant 0 : index
    %c0_45 = arith.constant 0 : index
    %116 = vector.load %arg11[%c0_44, %c0_45] : memref<1x128xf32, #tpu.memory_space<vmem>>, vector<1x128xf32>
    %117 = vector.broadcast %116 : vector<1x128xf32> to vector<8x128xf32>
    %118 = arith.addf %115, %117 : vector<8x128xf32>
    %cst_46 = arith.constant 0.000000e+00 : f32
    %119 = vector.broadcast %cst_46 : f32 to vector<8x128xf32>
    %120 = arith.maximumf %118, %119 : vector<8x128xf32>
    %121 = arith.truncf %120 : vector<8x128xf32> to vector<8x128xbf16>
    %c0_47 = arith.constant 0 : index
    %c0_48 = arith.constant 0 : index
    %122 = vector.load %arg12[%c0_47, %c0_48] : memref<128x128xbf16, #tpu.memory_space<vmem>>, vector<128x128xbf16>
    %cst_49 = arith.constant dense<0.000000e+00> : vector<8x128xf32>
    %123 = tpu.matmul %121, %122, %cst_49 {dimension_numbers = #tpu.dot_dimension_numbers<[1], [0], [0], [1], [0, 0, 1, 1], [], []>} : vector<8x128xbf16>, vector<128x128xbf16>, vector<8x128xf32> -> vector<8x128xf32>
    %c0_50 = arith.constant 0 : index
    %c0_51 = arith.constant 0 : index
    %124 = vector.load %arg13[%c0_50, %c0_51] : memref<1x128xf32, #tpu.memory_space<vmem>>, vector<1x128xf32>
    %125 = vector.broadcast %124 : vector<1x128xf32> to vector<8x128xf32>
    %126 = arith.addf %123, %125 : vector<8x128xf32>
    %c0_52 = arith.constant 0 : index
    %c0_53 = arith.constant 0 : index
    %127 = vector.load %arg14[%c0_52, %c0_53] : memref<8x128xf32, #tpu.memory_space<vmem>>, vector<8x128xf32>
    tpu.vector_store %arg14[%c0_52, %c0_53], %126 {strides = array<i32>} : memref<8x128xf32, #tpu.memory_space<vmem>>, vector<8x128xf32>,
    return
  }
}

</mosaic_0001>

<bundles_post_ra>
// kernel: tpu_custom_call.1
= control target key start
LH: loop header
LB: loop body
LE: loop exit
PB: predicated region body
PF: predicated region fallthrough
CT: control target
= control target key end

     0   :  { %19 = vsyncpa [#allocation3], 0  ;;  %s5627_s0 = inlined_call_operand.hbm [shape: bf16[448,128], index: 0, kind: input, shape index: {}]   ;;  %s5628_s1 = inlined_call_operand.hbm [shape: bf16[128,128], index: 1, kind: input, shape index: {}]   ;;  %s5629_s2 = inlined_call_operand.vmem [shape: f32[1,128], index: 2, kind: input, shape index: {}]   ;;  %s5630_s3 = inlined_call_operand.vmem [shape: f32[1,128], index: 3, kind: input, shape index: {}]   ;;  %s5631_s4 = inlined_call_operand.hbm [shape: bf16[384,128], index: 4, kind: input, shape index: {}]   ;;  %s5632_s5 = inlined_call_operand.vmem [shape: f32[1,128], index: 5, kind: input, shape index: {}]   ;;  %s5633_s6 = inlined_call_operand.vmem [shape: f32[1,128], index: 6, kind: input, shape index: {}]   ;;  %s5634_s7 = inlined_call_operand.hbm [shape: bf16[384,128], index: 7, kind: input, shape index: {}]   ;;  %s5635_s8 = inlined_call_operand.vmem [shape: f32[1,128], index: 8, kind: input, shape index: {}]   ;;  %s5636_s9 = inlined_call_operand.vmem [shape: f32[1,128], index: 9, kind: input, shape index: {}]   ;;  %s5637_s10 = inlined_call_operand.hbm [shape: bf16[896,128], index: 10, kind: input, shape index: {}]   ;;  %s5638_s11 = inlined_call_operand.vmem [shape: f32[1,128], index: 11, kind: input, shape index: {}]   ;;  %s5639_s12 = inlined_call_operand.hbm [shape: bf16[128,128], index: 12, kind: input, shape index: {}]   ;;  %s5640_s13 = inlined_call_operand.vmem [shape: f32[1,128], index: 13, kind: input, shape index: {}]   ;;  %s5641_s14 = inlined_call_operand.hbm [shape: f32[8,128], index: 14, kind: output, shape index: {}]  }
   0x1   :  { %20 = vsyncpa [#allocation6], 0 }
   0x2   :  { %21 = vsyncpa [#allocation9], 0 }
   0x3   :  { %22 = vsyncpa [#allocation12], 0 }
   0x4   :  { %23 = vsyncpa [#allocation4], 0  ;;  %s4223_s29 = smov [#allocation5]   ;;  %s4224_s15 = smov [#allocation8]  }
   0x5   :  { %s41_s30 = sshll.u32 %s4223_s29, 4  ;;  %s73_s16 = sshll.u32 %s4224_s15, 4  ;;  %s42_s30 = int_to_ptr.vmem [resolvable:$true] %s41_s30  ;;  %s4309_s16 = int_to_ptr.vmem [resolvable:$true] %s73_s16 }
   0x6   :  { %s4059_s19 = scalar_lea.hbm %s5628_s1, 1024 }
   0x7   :  { %p4060_p0 = scmp.ne.s32.totalorder %s5628_s1, %s4059_s19  ;;  %p4063_p1 = scmp.lt.u32.totalorder %s4059_s19, %s5628_s1 }
   0x9   :  { %p4065_p2 = pnand %p4063_p1, %p4060_p0 }
   0xb   :  { %4068 = shalt.err (!%p4065_p2)
}
   0xc   :  { %s4069_s24 = scalar_lea.vmem %s42_s30, 1024  ;;  %p4074_p4 = scmp.lt.s32.totalorder %s42_s30, %s42_s30 }
   0xd   :  { %p4070_p3 = scmp.ne.s32.totalorder %s42_s30, %s4069_s24  ;;  %p4075_p5 = scmp.lt.s32.totalorder %s4069_s24, %s4069_s24 }
   0xf   :  { %p4076_p6 = por %p4075_p5, %p4074_p4 }
  0x11   :  { %p4077_p7 = pnand %p4076_p6, %p4070_p3 }
  0x13   :  { %4080 = shalt.err (!%p4077_p7)
}
  0x14   :  { %s4225_s25 = smov 64   ;;  %s4226_s26 = smov 4  }
  0x15   :  { %47 = dma.hbm_to_vmem [thread:$0]  %s5628_s1, 1024, %s42_s30, [#allocation6], %s4225_s25, %s4225_s25, %s4226_s26  }
  0x16   :  { %s4081_s17 = scalar_lea.hbm %s5634_s7, 3072 }
  0x17   :  { %p4082_p8 = scmp.ne.s32.totalorder %s5634_s7, %s4081_s17  ;;  %p4085_p9 = scmp.lt.u32.totalorder %s4081_s17, %s5634_s7 }
  0x19   :  { %p4087_p10 = pnand %p4085_p9, %p4082_p8 }
  0x1b   :  { %4090 = shalt.err (!%p4087_p10)
}
  0x1c   :  { %s4091_s22 = scalar_lea.vmem %s4309_s16, 3072  ;;  %p4096_p12 = scmp.lt.s32.totalorder %s4309_s16, %s4309_s16 }
  0x1d   :  { %p4092_p11 = scmp.ne.s32.totalorder %s4309_s16, %s4091_s22  ;;  %p4097_p13 = scmp.lt.s32.totalorder %s4091_s22, %s4091_s22 }
  0x1f   :  { %p4098_p0 = por %p4097_p13, %p4096_p12 }
  0x21   :  { %p4099_p1 = pnand %p4098_p0, %p4092_p11 }
  0x23   :  { %4102 = shalt.err (!%p4099_p1)
}
  0x24   :  { %79 = dma.hbm_to_vmem [thread:$0]  %s5634_s7, 3072, %s4309_s16, [#allocation9], %s4225_s25, %s4225_s25, %s4226_s26  }
  0x25   :  { %s4227_s23 = smov [#allocation2]   ;;  %s4228_s27 = smov [#allocation7]  }
  0x26   :  { %s29_s24 = sshll.u32 %s4227_s23, 4  ;;  %s57_s28 = sshll.u32 %s4228_s27, 4  ;;  %s30_s24 = int_to_ptr.vmem [resolvable:$true] %s29_s24  ;;  %s4346_s28 = int_to_ptr.vmem [resolvable:$true] %s57_s28 }
  0x27   :  { %s4103_s17 = scalar_lea.hbm %s5627_s0, 3584 }
  0x28   :  { %p4104_p2 = scmp.ne.s32.totalorder %s5627_s0, %s4103_s17  ;;  %p4107_p3 = scmp.lt.u32.totalorder %s4103_s17, %s5627_s0 }
  0x2a   :  { %p4109_p4 = pnand %p4107_p3, %p4104_p2 }
  0x2c   :  { %4112 = shalt.err (!%p4109_p4)
}
  0x2d   :  { %s4113_s7 = scalar_lea.vmem %s30_s24, 3584  ;;  %p4118_p6 = scmp.lt.s32.totalorder %s30_s24, %s30_s24 }
  0x2e   :  { %p4114_p5 = scmp.ne.s32.totalorder %s30_s24, %s4113_s7  ;;  %p4119_p7 = scmp.lt.s32.totalorder %s4113_s7, %s4113_s7 }
  0x30   :  { %p4120_p8 = por %p4119_p7, %p4118_p6 }
  0x32   :  { %p4121_p9 = pnand %p4120_p8, %p4114_p5 }
  0x34   :  { %4124 = shalt.err (!%p4121_p9)
}
  0x35   :  { %35 = dma.hbm_to_vmem [thread:$0]  %s5627_s0, 3584, %s30_s24, [#allocation3], %s4225_s25, %s4225_s25, %s4226_s26  }
  0x36   :  { %s4125_s23 = scalar_lea.hbm %s5631_s4, 3072 }
  0x37   :  { %p4126_p10 = scmp.ne.s32.totalorder %s5631_s4, %s4125_s23  ;;  %p4129_p11 = scmp.lt.u32.totalorder %s4125_s23, %s5631_s4 }
  0x39   :  { %p4131_p12 = pnand %p4129_p11, %p4126_p10 }
  0x3b   :  { %4134 = shalt.err (!%p4131_p12)
}
  0x3c   :  { %s4135_s18 = scalar_lea.vmem %s4346_s28, 3072  ;;  %p4140_p0 = scmp.lt.s32.totalorder %s4346_s28, %s4346_s28 }
  0x3d   :  { %p4136_p13 = scmp.ne.s32.totalorder %s4346_s28, %s4135_s18  ;;  %p4141_p1 = scmp.lt.s32.totalorder %s4135_s18, %s4135_s18 }
  0x3f   :  { %p4142_p2 = por %p4141_p1, %p4140_p0 }
  0x41   :  { %p4143_p3 = pnand %p4142_p2, %p4136_p13 }
  0x43   :  { %4146 = shalt.err (!%p4143_p3)
}
  0x44   :  { %63 = dma.hbm_to_vmem [thread:$0]  %s5631_s4, 3072, %s4346_s28, [#allocation6], %s4225_s25, %s4225_s25, %s4226_s26  }
  0x45   :  { %s4229_s19 = smov [#allocation10]   ;;  %s4230_s21 = smov [#allocation11]  }
  0x46   :  { %s89_s20 = sshll.u32 %s4229_s19, 4  ;;  %s103_s7 = sshll.u32 %s4230_s21, 4  ;;  %s90_s20 = int_to_ptr.vmem [resolvable:$true] %s89_s20  ;;  %s4383_s7 = int_to_ptr.vmem [resolvable:$true] %s103_s7 }
  0x47   :  { %s4147_s1 = scalar_lea.hbm %s5637_s10, 7168 }
  0x48   :  { %p4148_p4 = scmp.ne.s32.totalorder %s5637_s10, %s4147_s1  ;;  %p4151_p5 = scmp.lt.u32.totalorder %s4147_s1, %s5637_s10 }
  0x4a   :  { %p4153_p6 = pnand %p4151_p5, %p4148_p4 }
  0x4c   :  { %4156 = shalt.err (!%p4153_p6)
}
  0x4d   :  { %s4157_s4 = scalar_lea.vmem %s90_s20, 7168  ;;  %p4162_p8 = scmp.lt.s32.totalorder %s90_s20, %s90_s20 }
  0x4e   :  { %p4158_p7 = scmp.ne.s32.totalorder %s90_s20, %s4157_s4  ;;  %p4163_p9 = scmp.lt.s32.totalorder %s4157_s4, %s4157_s4 }
  0x50   :  { %p4164_p10 = por %p4163_p9, %p4162_p8 }
  0x52   :  { %p4165_p11 = pnand %p4164_p10, %p4158_p7 }
  0x54   :  { %4168 = shalt.err (!%p4165_p11)
}
  0x55   :  { %95 = dma.hbm_to_vmem [thread:$0]  %s5637_s10, 7168, %s90_s20, [#allocation9], %s4225_s25, %s4225_s25, %s4226_s26  }
  0x56   :  { %s4169_s0 = scalar_lea.hbm %s5639_s12, 1024 }
  0x57   :  { %p4170_p12 = scmp.ne.s32.totalorder %s5639_s12, %s4169_s0  ;;  %p4173_p13 = scmp.lt.u32.totalorder %s4169_s0, %s5639_s12 }
  0x59   :  { %p4175_p0 = pnand %p4173_p13, %p4170_p12 }
  0x5b   :  { %4178 = shalt.err (!%p4175_p0)
}
  0x5c   :  { %s4179_s22 = scalar_lea.vmem %s4383_s7, 1024  ;;  %p4184_p2 = scmp.lt.s32.totalorder %s4383_s7, %s4383_s7 }
  0x5d   :  { %p4180_p1 = scmp.ne.s32.totalorder %s4383_s7, %s4179_s22  ;;  %p4185_p3 = scmp.lt.s32.totalorder %s4179_s22, %s4179_s22 }
  0x5f   :  { %p4186_p4 = por %p4185_p3, %p4184_p2 }
  0x61   :  { %p4187_p5 = pnand %p4186_p4, %p4180_p1 }
  0x63   :  { %4190 = shalt.err (!%p4187_p5)
}
  0x64   :  { %109 = dma.hbm_to_vmem [thread:$0]  %s5639_s12, 1024, %s4383_s7, [#allocation12], %s4225_s25, %s4225_s25, %s4226_s26  }
  0x65   :  { %4213 = dma.done.wait [#allocation3], 3584  }
  0x66   :  { %4214 = vsyncadd [#allocation3], 4294963712 }
  0x67   :  { %4215 = dma.done.wait [#allocation6], 4096  }
  0x68   :  { %4216 = vsyncadd [#allocation6], 4294963200 }
  0x69   :  { %4217 = dma.done.wait [#allocation9], 10240  }
  0x6a   :  { %4218 = vsyncadd [#allocation9], 4294957056 }
  0x6b   :  { %4219 = dma.done.wait [#allocation12], 1024  }
  0x6c   :  { %4220 = vsyncadd [#allocation12], 4294966272  ;;  %v3905_v0 = vld [vmem:[#allocation5] sm:$0xff]   ;;  %v3906_v1 = vld [vmem:[#allocation5 + $0x8] sm:$0xff]   ;;  %vm1151_vm0 = vcmask 1043456   ;;  %vm4232_vm2 = vmmov 0  }
  0x6d   :  { %3694 = vmatprep.subr.bf16.mxu0 %v3905_v0  ;;  %v3907_v2 = vld [vmem:[#allocation5 + $0x10] sm:$0xff]   ;;  %v3908_v3 = vld [vmem:[#allocation5 + $0x18] sm:$0xff]   ;;  %v3913_v4 = vld [vmem:[#allocation2] sm:$0xff]  }
  0x6e   :  { %3695 = vmatpush3.bf16.msra.mxu0 %v3905_v0  ;;  %3710 = vmatprep.mubr.bf16.mxu0 %v3913_v4  ;;  %v3909_v5 = vld [vmem:[#allocation5 + $0x20] sm:$0xff]   ;;  %v3910_v6 = vld [vmem:[#allocation5 + $0x28] sm:$0xff]   ;;  %v3911_v7 = vld [vmem:[#allocation5 + $0x30] sm:$0xff]  }
  0x6f   :  { %3696 = vmatprep.subr.bf16.mxu0 %v3906_v1  ;;  %v3912_v8 = vld [vmem:[#allocation5 + $0x38] sm:$0xff]   ;;  %v3914_v9 = vld [vmem:[#allocation2 + $0x8] sm:$0xff]   ;;  %v3915_v10 = vld [vmem:[#allocation2 + $0x10] sm:$0xff]  }
  0x70   :  { %v3916_v11 = vld [vmem:[#allocation2 + $0x18] sm:$0xff]   ;;  %v3917_v12 = vld [vmem:[#allocation2 + $0x20] sm:$0xff]   ;;  %v3918_v13 = vld [vmem:[#allocation2 + $0x28] sm:$0xff]  }
  0x71   :  { %v3919_v14 = vld [vmem:[#allocation2 + $0x30] sm:$0xff]   ;;  %v3920_v15 = vld [vmem:[#allocation2 + $0x38] sm:$0xff]   ;;  %v3921_v16 = vld [vmem:[#allocation2 + $0x40] sm:$0xff]  }
  0x72   :  { %3697 = vmatpush3.bf16.msra.mxu0 %v3906_v1  ;;  %v3922_v17 = vld [vmem:[#allocation2 + $0x48] sm:$0xff]   ;;  %v3923_v18 = vld [vmem:[#allocation2 + $0x50] sm:$0xff]   ;;  %v3924_v19 = vld [vmem:[#allocation2 + $0x58] sm:$0xff]  }
  0x73   :  { %3698 = vmatprep.subr.bf16.mxu0 %v3907_v2  ;;  %v3925_v20 = vld [vmem:[#allocation2 + $0x60] sm:$0xff]   ;;  %v3926_v21 = vld [vmem:[#allocation2 + $0x68] sm:$0xff]   ;;  %v3927_v22 = vld [vmem:[#allocation2 + $0x70] sm:$0xff]  }
  0x74   :  { %v3928_v23 = vld [vmem:[#allocation2 + $0x78] sm:$0xff]   ;;  %v3929_v24 = vld [vmem:[#allocation2 + $0x80] sm:$0xff]   ;;  %v3930_v25 = vld [vmem:[#allocation2 + $0x88] sm:$0xff]  }
  0x75   :  { %v3931_v26 = vld [vmem:[#allocation2 + $0x90] sm:$0xff]   ;;  %v3932_v27 = vld [vmem:[#allocation2 + $0x98] sm:$0xff]   ;;  %v3933_v28 = vld [vmem:[#allocation2 + $0xa0] sm:$0xff]  }
  0x76   :  { %3699 = vmatpush3.bf16.msra.mxu0 %v3907_v2  ;;  %v3934_v29 = vld [vmem:[#allocation2 + $0xa8] sm:$0xff]   ;;  %v3935_v30 = vld [vmem:[#allocation2 + $0xb0] sm:$0xff]   ;;  %v3936_v31 = vld [vmem:[#allocation2 + $0xb8] sm:$0xff]  }
  0x77   :  { %3700 = vmatprep.subr.bf16.mxu0 %v3908_v3  ;;  %v3937_v32 = vld [vmem:[#allocation2 + $0xc0] sm:$0xff]   ;;  %v3938_v33 = vld [vmem:[#allocation2 + $0xc8] sm:$0xff]   ;;  %v3939_v34 = vld [vmem:[#allocation2 + $0xd0] sm:$0xff]  }
  0x78   :  { %v3940_v35 = vld [vmem:[#allocation2 + $0xd8] sm:$0xff]   ;;  %vm5042_vm1 = vmneg %vm1151_vm0 }
  0x7a   :  { %3701 = vmatpush3.bf16.msra.mxu0 %v3908_v3 }
  0x7b   :  { %3702 = vmatprep.subr.bf16.mxu0 %v3909_v5 }
  0x7e   :  { %3703 = vmatpush3.bf16.msra.mxu0 %v3909_v5 }
  0x7f   :  { %3704 = vmatprep.subr.bf16.mxu0 %v3910_v6 }
  0x82   :  { %3705 = vmatpush3.bf16.msra.mxu0 %v3910_v6 }
  0x83   :  { %3706 = vmatprep.subr.bf16.mxu0 %v3911_v7 }
  0x86   :  { %3707 = vmatpush3.bf16.msra.mxu0 %v3911_v7 }
  0x87   :  { %3708 = vmatprep.subr.bf16.mxu0 %v3912_v8 }
  0x8a   :  { %3709 = vmatpush3.bf16.msra.mxu0 %v3912_v8 }
  0x8d   :  { %3711 = vmatmul.mubr.bf16.vlgmr.msra.gmra.mrb[0].mxu0 %v3914_v9 }
  0x8e   :  { %3714 = vmatprep.mubr.bf16.mxu0 %v3915_v10 }
  0x95   :  { %3715 = vmatmul.mubr.bf16.gmra.mrb[4].mxu0 %v3916_v11 }
  0x96   :  { %3718 = vmatprep.mubr.bf16.mxu0 %v3917_v12 }
  0x9d   :  { %3719 = vmatmul.mubr.bf16.gmra.mrb[8].mxu0 %v3918_v13 }
  0x9e   :  { %3722 = vmatprep.mubr.bf16.mxu0 %v3919_v14 }
  0xa5   :  { %3723 = vmatmul.mubr.bf16.gmra.mrb[12].mxu0 %v3920_v15 }
  0xa6   :  { %3726 = vmatprep.mubr.bf16.mxu0 %v3921_v16 }
  0xad   :  { %3727 = vmatmul.mubr.bf16.gmra.mrb[16].mxu0 %v3922_v17 }
  0xae   :  { %3730 = vmatprep.mubr.bf16.mxu0 %v3923_v18 }
  0xb5   :  { %3731 = vmatmul.mubr.bf16.gmra.mrb[20].mxu0 %v3924_v19 }
  0xb6   :  { %3734 = vmatprep.mubr.bf16.mxu0 %v3925_v20 }
  0xbd   :  { %3735 = vmatmul.mubr.bf16.gmra.mrb[24].mxu0 %v3926_v21 }
  0xbe   :  { %3738 = vmatprep.mubr.bf16.mxu0 %v3927_v22 }
  0xc5   :  { %3739 = vmatmul.mubr.bf16.gmra.mrb[28].mxu0 %v3928_v23 }
  0xc6   :  { %3742 = vmatprep.mubr.bf16.mxu0 %v3929_v24 }
  0xcd   :  { %3743 = vmatmul.mubr.bf16.gmra.mrb[32].mxu0 %v3930_v25 }
  0xce   :  { %3746 = vmatprep.mubr.bf16.mxu0 %v3931_v26 }
  0xd5   :  { %3747 = vmatmul.mubr.bf16.gmra.mrb[36].mxu0 %v3932_v27 }
  0xd6   :  { %3750 = vmatprep.mubr.bf16.mxu0 %v3933_v28 }
  0xdd   :  { %3751 = vmatmul.mubr.bf16.gmra.mrb[40].mxu0 %v3934_v29 }
  0xde   :  { %3754 = vmatprep.mubr.bf16.mxu0 %v3935_v30 }
  0xe5   :  { %3755 = vmatmul.mubr.bf16.gmra.mrb[44].mxu0 %v3936_v31 }
  0xe6   :  { %3758 = vmatprep.mubr.bf16.mxu0 %v3937_v32 }
  0xed   :  { %3759 = vmatmul.mubr.bf16.gmra.mrb[48].mxu0 %v3938_v33 }
  0xee   :  { %3762 = vmatprep.mubr.bf16.mxu0 %v3939_v34 }
  0xf5   :  { %3763 = vmatmul.mubr.bf16.gmra.mrb[52].mxu0 %v3940_v35 }
 0x160   :  { %v4420_v36 = vpop.f32.mrb[0].mxu0 }
 0x161   :  { %v4422_v37 = vpop.f32.mrb[1].mxu0 }
 0x162   :  { %v4424_v38 = vpop.f32.mrb[2].mxu0 }
 0x163   :  { %v4426_v39 = vpop.f32.mrb[3].mxu0 }
 0x164   :  { %v678_v40 = vadd.f32 %v4426_v39, %v4422_v37 }
 0x166   :  { %v679_v41 = vadd.f32 %v4420_v36, %v678_v40 }
 0x168   :  { %v4431_v42 = vpop.f32.mrb[4].mxu0  ;;  %v680_v43 = vadd.f32 %v4424_v38, %v679_v41 }
 0x169   :  { %v4434_v44 = vpop.f32.mrb[5].mxu0 }
 0x16a   :  { %v681_v45 = vadd.f32 %v680_v43, %v4434_v44  ;;  %v4437_v46 = vpop.f32.mrb[6].mxu0 }
 0x16b   :  { %v4439_v47 = vpop.f32.mrb[7].mxu0 }
 0x16c   :  { %v682_v48 = vadd.f32 %v681_v45, %v4439_v47 }
 0x16e   :  { %v683_v49 = vadd.f32 %v4431_v42, %v682_v48 }
 0x170   :  { %v4443_v50 = vpop.f32.mrb[8].mxu0  ;;  %v684_v51 = vadd.f32 %v4437_v46, %v683_v49 }
 0x171   :  { %v4446_v52 = vpop.f32.mrb[9].mxu0 }
 0x172   :  { %v685_v53 = vadd.f32 %v684_v51, %v4446_v52  ;;  %v4449_v54 = vpop.f32.mrb[10].mxu0 }
 0x173   :  { %v4451_v55 = vpop.f32.mrb[11].mxu0 }
 0x174   :  { %v686_v56 = vadd.f32 %v685_v53, %v4451_v55 }
 0x176   :  { %v687_v57 = vadd.f32 %v4443_v50, %v686_v56 }
 0x178   :  { %v4455_v58 = vpop.f32.mrb[12].mxu0  ;;  %v688_v59 = vadd.f32 %v4449_v54, %v687_v57 }
 0x179   :  { %v4458_v60 = vpop.f32.mrb[13].mxu0 }
 0x17a   :  { %v689_v61 = vadd.f32 %v688_v59, %v4458_v60  ;;  %v4461_v62 = vpop.f32.mrb[14].mxu0 }
 0x17b   :  { %v4463_v63 = vpop.f32.mrb[15].mxu0 }
 0x17c   :  { %v690_v0 = vadd.f32 %v689_v61, %v4463_v63 }
 0x17e   :  { %v691_v1 = vadd.f32 %v4455_v58, %v690_v0 }
 0x180   :  { %v4467_v2 = vpop.f32.mrb[16].mxu0  ;;  %v692_v3 = vadd.f32 %v4461_v62, %v691_v1 }
 0x181   :  { %v4470_v4 = vpop.f32.mrb[17].mxu0 }
 0x182   :  { %v693_v5 = vadd.f32 %v692_v3, %v4470_v4  ;;  %v4473_v6 = vpop.f32.mrb[18].mxu0 }
 0x183   :  { %v4475_v7 = vpop.f32.mrb[19].mxu0 }
 0x184   :  { %v694_v8 = vadd.f32 %v693_v5, %v4475_v7 }
 0x186   :  { %v695_v9 = vadd.f32 %v4467_v2, %v694_v8 }
 0x188   :  { %v4479_v10 = vpop.f32.mrb[20].mxu0  ;;  %v696_v11 = vadd.f32 %v4473_v6, %v695_v9 }
 0x189   :  { %v4482_v12 = vpop.f32.mrb[21].mxu0 }
 0x18a   :  { %v697_v13 = vadd.f32 %v696_v11, %v4482_v12  ;;  %v4485_v14 = vpop.f32.mrb[22].mxu0 }
 0x18b   :  { %v4487_v15 = vpop.f32.mrb[23].mxu0 }
 0x18c   :  { %v698_v16 = vadd.f32 %v697_v13, %v4487_v15 }
 0x18e   :  { %v699_v17 = vadd.f32 %v4479_v10, %v698_v16 }
 0x190   :  { %v4491_v18 = vpop.f32.mrb[24].mxu0  ;;  %v700_v19 = vadd.f32 %v4485_v14, %v699_v17 }
 0x191   :  { %v4494_v20 = vpop.f32.mrb[25].mxu0 }
 0x192   :  { %v701_v21 = vadd.f32 %v700_v19, %v4494_v20  ;;  %v4497_v22 = vpop.f32.mrb[26].mxu0 }
 0x193   :  { %v4499_v23 = vpop.f32.mrb[27].mxu0 }
 0x194   :  { %v702_v24 = vadd.f32 %v701_v21, %v4499_v23 }
 0x196   :  { %v703_v25 = vadd.f32 %v4491_v18, %v702_v24 }
 0x198   :  { %v4503_v26 = vpop.f32.mrb[28].mxu0  ;;  %v704_v27 = vadd.f32 %v4497_v22, %v703_v25 }
 0x199   :  { %v4506_v28 = vpop.f32.mrb[29].mxu0 }
 0x19a   :  { %v705_v29 = vadd.f32 %v704_v27, %v4506_v28  ;;  %v4509_v30 = vpop.f32.mrb[30].mxu0 }
 0x19b   :  { %v4511_v31 = vpop.f32.mrb[31].mxu0 }
 0x19c   :  { %v706_v32 = vadd.f32 %v705_v29, %v4511_v31 }
 0x19e   :  { %v707_v33 = vadd.f32 %v4503_v26, %v706_v32 }
 0x1a0   :  { %v4515_v34 = vpop.f32.mrb[32].mxu0  ;;  %v708_v35 = vadd.f32 %v4509_v30, %v707_v33 }
 0x1a1   :  { %v4518_v40 = vpop.f32.mrb[33].mxu0 }
 0x1a2   :  { %v709_v41 = vadd.f32 %v708_v35, %v4518_v40  ;;  %v4521_v43 = vpop.f32.mrb[34].mxu0 }
 0x1a3   :  { %v4523_v45 = vpop.f32.mrb[35].mxu0 }
 0x1a4   :  { %v710_v48 = vadd.f32 %v709_v41, %v4523_v45 }
 0x1a6   :  { %v711_v49 = vadd.f32 %v4515_v34, %v710_v48 }
 0x1a8   :  { %v4527_v51 = vpop.f32.mrb[36].mxu0  ;;  %v712_v53 = vadd.f32 %v4521_v43, %v711_v49 }
 0x1a9   :  { %v4530_v56 = vpop.f32.mrb[37].mxu0 }
 0x1aa   :  { %v713_v57 = vadd.f32 %v712_v53, %v4530_v56  ;;  %v4533_v59 = vpop.f32.mrb[38].mxu0 }
 0x1ab   :  { %v4535_v61 = vpop.f32.mrb[39].mxu0 }
 0x1ac   :  { %v714_v0 = vadd.f32 %v713_v57, %v4535_v61 }
 0x1ae   :  { %v715_v1 = vadd.f32 %v4527_v51, %v714_v0 }
 0x1b0   :  { %v4539_v3 = vpop.f32.mrb[40].mxu0  ;;  %v716_v5 = vadd.f32 %v4533_v59, %v715_v1 }
 0x1b1   :  { %v4542_v8 = vpop.f32.mrb[41].mxu0 }
 0x1b2   :  { %v717_v9 = vadd.f32 %v716_v5, %v4542_v8  ;;  %v4545_v11 = vpop.f32.mrb[42].mxu0 }
 0x1b3   :  { %v4547_v13 = vpop.f32.mrb[43].mxu0 }
 0x1b4   :  { %v718_v16 = vadd.f32 %v717_v9, %v4547_v13 }
 0x1b6   :  { %v719_v17 = vadd.f32 %v4539_v3, %v718_v16 }
 0x1b8   :  { %v4551_v19 = vpop.f32.mrb[44].mxu0  ;;  %v720_v21 = vadd.f32 %v4545_v11, %v719_v17 }
 0x1b9   :  { %v4554_v24 = vpop.f32.mrb[45].mxu0 }
 0x1ba   :  { %v721_v25 = vadd.f32 %v720_v21, %v4554_v24  ;;  %v4557_v27 = vpop.f32.mrb[46].mxu0 }
 0x1bb   :  { %5664 = vst [vmem:[#allocation19_spill] sm:$0xff] %v4557_v27  ;;  %v4559_v29 = vpop.f32.mrb[47].mxu0 }
 0x1bc   :  { %v722_v32 = vadd.f32 %v721_v25, %v4559_v29 }
 0x1be   :  { %v723_v33 = vadd.f32 %v4551_v19, %v722_v32 }
 0x1c0   :  { %v4563_v35 = vpop.f32.mrb[48].mxu0  ;;  %v724_v41 = vadd.f32 %v4557_v27, %v723_v33 }
 0x1c1   :  { %5665 = vst [vmem:[#allocation20_spill] sm:$0xff] %v4563_v35  ;;  %v4566_v48 = vpop.f32.mrb[49].mxu0 }
 0x1c2   :  { %5666 = vst [vmem:[#allocation21_spill] sm:$0xff] %v4566_v48  ;;  %v725_v49 = vadd.f32 %v724_v41, %v4566_v48  ;;  %v4569_v53 = vpop.f32.mrb[50].mxu0 }
 0x1c3   :  { %5667 = vst [vmem:[#allocation22_spill] sm:$0xff] %v4569_v53  ;;  %v4571_v57 = vpop.f32.mrb[51].mxu0 }
 0x1c4   :  { %5668 = vst [vmem:[#allocation23_spill] sm:$0xff] %v4571_v57  ;;  %v726_v0 = vadd.f32 %v725_v49, %v4571_v57 }
 0x1c6   :  { %v727_v1 = vadd.f32 %v4563_v35, %v726_v0 }
 0x1c8   :  { %v4575_v5 = vpop.f32.mrb[52].mxu0  ;;  %v728_v9 = vadd.f32 %v4569_v53, %v727_v1 }
 0x1c9   :  { %v4578_v16 = vpop.f32.mrb[53].mxu0 }
 0x1ca   :  { %5669 = vst [vmem:[#allocation24_spill] sm:$0xff] %v4578_v16  ;;  %v729_v17 = vadd.f32 %v728_v9, %v4578_v16  ;;  %v4581_v21 = vpop.f32.mrb[54].mxu0 }
 0x1cb   :  { %v4583_v25 = vpop.f32.mrb[55].mxu0 }
 0x1cc   :  { %v730_v32 = vadd.f32 %v729_v17, %v4583_v25 }
 0x1ce   :  { %v731_v33 = vadd.f32 %v4575_v5, %v730_v32 }
 0x1d0   :  { %v732_v41 = vadd.f32 %v4581_v21, %v731_v33 }
 0x1d2   :  { %v733_v49 = vrot.slane %v732_v41, 4 }
 0x1d4   :  { %v734_v0 = vadd.f32 %v733_v49, %v732_v41 }
 0x1d6   :  { %v735_v35 = vrot.slane %v734_v0, 2 }
 0x1d8   :  { %v736_v57 = vadd.f32 %v735_v35, %v734_v0 }
 0x1da   :  { %v737_v48 = vrot.slane %v736_v57, 1 }
 0x1dc   :  { %v738_v1 = vadd.f32 %v737_v48, %v736_v57 }
 0x1de   :  { %v739_v53 = vmul.f32 0.002232143, %v738_v1 }
 0x1e0   :  { %v4589_v27 = vsub.f32 %v4422_v37, %v739_v53  ;;  %v4592_v9 = vsub.f32 %v4426_v39, %v739_v53  ;;  %v4595_v16 = vsub.f32 %v4420_v36, %v739_v53  ;;  %v4598_v17 = vsub.f32 %v4424_v38, %v739_v53 }
 0x1e1   :  { %v4601_v32 = vsub.f32 %v4434_v44, %v739_v53  ;;  %v4604_v35 = vsub.f32 %v4439_v47, %v739_v53  ;;  %v4607_v48 = vsub.f32 %v4431_v42, %v739_v53  ;;  %v4610_v37 = vsub.f32 %v4437_v46, %v739_v53 }
 0x1e2   :  { %5670 = vst [vmem:[#allocation25_spill] sm:$0xff] %v4589_v27  ;;  %5671 = vst [vmem:[#allocation26_spill] sm:$0xff] %v4592_v9  ;;  %v4613_v39 = vsub.f32 %v4446_v52, %v739_v53  ;;  %v4616_v36 = vsub.f32 %v4451_v55, %v739_v53  ;;  %v4619_v38 = vsub.f32 %v4443_v50, %v739_v53 }
 0x1e3   :  { %v4622_v44 = vsub.f32 %v4449_v54, %v739_v53  ;;  %v4625_v47 = vsub.f32 %v4458_v60, %v739_v53  ;;  %v4628_v42 = vsub.f32 %v4463_v63, %v739_v53  ;;  %v4631_v46 = vsub.f32 %v4455_v58, %v739_v53 }
 0x1e4   :  { %v4634_v52 = vsub.f32 %v4461_v62, %v739_v53  ;;  %v4637_v55 = vsub.f32 %v4470_v4, %v739_v53  ;;  %v4640_v50 = vsub.f32 %v4475_v7, %v739_v53  ;;  %v4643_v54 = vsub.f32 %v4467_v2, %v739_v53 }
 0x1e5   :  { %5672 = vst [vmem:[#allocation27_spill] sm:$0xff] %v4628_v42  ;;  %v4646_v60 = vsub.f32 %v4473_v6, %v739_v53  ;;  %v4649_v63 = vsub.f32 %v4482_v12, %v739_v53  ;;  %v4652_v58 = vsub.f32 %v4487_v15, %v739_v53  ;;  %v4655_v62 = vsub.f32 %v4479_v10, %v739_v53 }
 0x1e6   :  { %v4658_v4 = vsub.f32 %v4485_v14, %v739_v53  ;;  %v4661_v7 = vsub.f32 %v4494_v20, %v739_v53  ;;  %v4664_v2 = vsub.f32 %v4499_v23, %v739_v53  ;;  %v4667_v6 = vsub.f32 %v4491_v18, %v739_v53 }
 0x1e7   :  { %v4670_v12 = vsub.f32 %v4497_v22, %v739_v53  ;;  %v4673_v15 = vsub.f32 %v4506_v28, %v739_v53  ;;  %v4676_v10 = vsub.f32 %v4511_v31, %v739_v53  ;;  %v4679_v14 = vsub.f32 %v4503_v26, %v739_v53 }
 0x1e8   :  { %5673 = vst [vmem:[#allocation28_spill] sm:$0xff] %v4661_v7  ;;  %v4682_v20 = vsub.f32 %v4509_v30, %v739_v53  ;;  %v4685_v23 = vsub.f32 %v4518_v40, %v739_v53  ;;  %v4688_v18 = vsub.f32 %v4523_v45, %v739_v53  ;;  %v4691_v22 = vsub.f32 %v4515_v34, %v739_v53 }
 0x1e9   :  { %v4694_v28 = vsub.f32 %v4521_v43, %v739_v53  ;;  %v4697_v31 = vsub.f32 %v4530_v56, %v739_v53  ;;  %v4700_v26 = vsub.f32 %v4535_v61, %v739_v53  ;;  %v4703_v30 = vsub.f32 %v4527_v51, %v739_v53 }
 0x1ea   :  { %v4706_v40 = vsub.f32 %v4533_v59, %v739_v53  ;;  %v4709_v45 = vsub.f32 %v4542_v8, %v739_v53  ;;  %v4712_v34 = vsub.f32 %v4547_v13, %v739_v53  ;;  %v4715_v43 = vsub.f32 %v4539_v3, %v739_v53  ;;  %v5676_v8 = vld [vmem:[#allocation19_spill] sm:$0xff]  ;;  %v5678_v13 = vld [vmem:[#allocation21_spill] sm:$0xff] }
 0x1eb   :  { %v4718_v56 = vsub.f32 %v4545_v11, %v739_v53  ;;  %v4721_v61 = vsub.f32 %v4554_v24, %v739_v53  ;;  %v4724_v51 = vsub.f32 %v4559_v29, %v739_v53  ;;  %v4727_v59 = vsub.f32 %v4551_v19, %v739_v53  ;;  %v5680_v3 = vld [vmem:[#allocation23_spill] sm:$0xff]  ;;  %v5682_v11 = vld [vmem:[#allocation20_spill] sm:$0xff]  ;;  %v5684_v24 = vld [vmem:[#allocation22_spill] sm:$0xff] }
 0x1ec   :  { %v4730_v57 = vsub.f32 %v5676_v8, %v739_v53  ;;  %v4733_v33 = vsub.f32 %v5678_v13, %v739_v53  ;;  %v4736_v41 = vsub.f32 %v5680_v3, %v739_v53  ;;  %v4739_v49 = vsub.f32 %v5682_v11, %v739_v53  ;;  %v5686_v29 = vld [vmem:[#allocation24_spill] sm:$0xff] }
 0x1ed   :  { %5674 = vst [vmem:[#allocation29_spill] sm:$0xff] %v4724_v51  ;;  %5675 = vst [vmem:[#allocation30_spill] sm:$0xff] %v4727_v59  ;;  %v4742_v0 = vsub.f32 %v5684_v24, %v739_v53  ;;  %v4745_v1 = vsub.f32 %v5686_v29, %v739_v53  ;;  %v4748_v19 = vsub.f32 %v4583_v25, %v739_v53 }
 0x1ee   :  { %5677 = vst [vmem:[#allocation19_spill] sm:$0xff] %v4730_v57  ;;  %5679 = vst [vmem:[#allocation21_spill] sm:$0xff] %v4733_v33  ;;  %v4751_v8 = vsub.f32 %v4575_v5, %v739_v53  ;;  %v4754_v13 = vsub.f32 %v4581_v21, %v739_v53  ;;  %v796_v3 = vmul.f32 %v4589_v27, %v4589_v27 }
 0x1ef   :  { %5681 = vst [vmem:[#allocation23_spill] sm:$0xff] %v4736_v41  ;;  %5683 = vst [vmem:[#allocation20_spill] sm:$0xff] %v4739_v49  ;;  %v797_v11 = vmul.f32 %v4592_v9, %v4592_v9  ;;  %v798_v24 = vmul.f32 %v4595_v16, %v4595_v16  ;;  %v799_v25 = vmul.f32 %v4598_v17, %v4598_v17 }
 0x1f0   :  { %5685 = vst [vmem:[#allocation22_spill] sm:$0xff] %v4742_v0  ;;  %5687 = vst [vmem:[#allocation24_spill] sm:$0xff] %v4748_v19  ;;  %v800_v5 = vmul.f32 %v4601_v32, %v4601_v32  ;;  %v801_v53 = vmul.f32 %v4604_v35, %v4604_v35  ;;  %v802_v27 = vmul.f32 %v4607_v48, %v4607_v48 }
 0x1f1   :  { %5688 = vst [vmem:[#allocation31_spill] sm:$0xff] %v4751_v8  ;;  %5689 = vst [vmem:[#allocation32_spill] sm:$0xff] %v4754_v13  ;;  %v852_v29 = vadd.f32 %v797_v11, %v796_v3  ;;  %v3941_v13 = vld [vmem:[#allocation7 + $0x80] sm:$0xff]   ;;  %v803_v3 = vmul.f32 %v4610_v37, %v4610_v37 }
 0x1f2   :  { %3766 = vmatprep.subr.bf16.mxu0 %v3941_v13 }
 0x1f3   :  { %v853_v19 = vadd.f32 %v852_v29, %v798_v24  ;;  %3767 = vmatpush3.bf16.msra.mxu0 %v3941_v13  ;;  %v804_v24 = vmul.f32 %v4613_v39, %v4613_v39  ;;  %v809_v13 = vmul.f32 %v4628_v42, %v4628_v42  ;;  %v3944_v42 = vld [vmem:[#allocation7] sm:$0xff]  }
 0x1f5   :  { %v854_v8 = vadd.f32 %v853_v19, %v799_v25  ;;  %v805_v19 = vmul.f32 %v4616_v36, %v4616_v36 }
 0x1f7   :  { %v855_v21 = vadd.f32 %v854_v8, %v800_v5  ;;  %v806_v8 = vmul.f32 %v4619_v38, %v4619_v38 }
 0x1f9   :  { %v856_v9 = vadd.f32 %v855_v21, %v801_v53  ;;  %v807_v53 = vmul.f32 %v4622_v44, %v4622_v44 }
 0x1fb   :  { %v857_v11 = vadd.f32 %v856_v9, %v802_v27  ;;  %v808_v27 = vmul.f32 %v4625_v47, %v4625_v47 }
 0x1fd   :  { %v858_v29 = vadd.f32 %v857_v11, %v803_v3  ;;  %v810_v11 = vmul.f32 %v4631_v46, %v4631_v46 }
 0x1ff   :  { %v859_v25 = vadd.f32 %v858_v29, %v804_v24  ;;  %v811_v29 = vmul.f32 %v4634_v52, %v4634_v52 }
 0x201   :  { %v860_v5 = vadd.f32 %v859_v25, %v805_v19  ;;  %v812_v25 = vmul.f32 %v4637_v55, %v4637_v55 }
 0x203   :  { %v861_v21 = vadd.f32 %v860_v5, %v806_v8  ;;  %v813_v5 = vmul.f32 %v4640_v50, %v4640_v50 }
 0x205   :  { %v862_v9 = vadd.f32 %v861_v21, %v807_v53  ;;  %v3943_v21 = vld [vmem:[#allocation7 + $0x40] sm:$0xff]  }
 0x206   :  { %3415 = vmatprep.subr.bf16.mxu1 %v3943_v21  ;;  %v818_v21 = vmul.f32 %v4655_v62, %v4655_v62 }
 0x207   :  { %v863_v3 = vadd.f32 %v862_v9, %v808_v27  ;;  %v814_v27 = vmul.f32 %v4643_v54, %v4643_v54  ;;  %3416 = vmatpush3.bf16.msra.mxu1 %v3944_v42  ;;  %v3949_v42 = vld [vmem:[#allocation7 + $0x10] sm:$0xff]  }
 0x209   :  { %v864_v24 = vadd.f32 %v863_v3, %v809_v13  ;;  %v815_v13 = vmul.f32 %v4646_v60, %v4646_v60 }
 0x20b   :  { %v865_v19 = vadd.f32 %v864_v24, %v810_v11  ;;  %v3942_v11 = vld [vmem:[#allocation7 + $0x88] sm:$0xff]  }
 0x20c   :  { %v3946_v24 = vld [vmem:[#allocation7 + $0x48] sm:$0xff]   ;;  %3768 = vmatprep.subr.bf16.mxu0 %v3942_v11 }
 0x20d   :  { %v866_v8 = vadd.f32 %v865_v19, %v811_v29  ;;  %v816_v29 = vmul.f32 %v4649_v63, %v4649_v63  ;;  %3769 = vmatpush3.bf16.msra.mxu0 %v3942_v11  ;;  %3417 = vmatprep.subr.bf16.mxu1 %v3946_v24  ;;  %v3950_v11 = vld [vmem:[#allocation7 + $0x58] sm:$0xff]   ;;  %v820_v24 = vmul.f32 %v4661_v7, %v4661_v7  ;;  %v3955_v7 = vld [vmem:[#allocation7 + $0xa0] sm:$0xff]  }
 0x20f   :  { %v867_v53 = vadd.f32 %v866_v8, %v812_v25  ;;  %v3947_v25 = vld [vmem:[#allocation7 + $0x8] sm:$0xff]   ;;  %v817_v8 = vmul.f32 %v4652_v58, %v4652_v58 }
 0x210   :  { %3418 = vmatpush3.bf16.msra.mxu1 %v3947_v25  ;;  %v3952_v25 = vld [vmem:[#allocation7 + $0x98] sm:$0xff]  }
 0x211   :  { %v868_v9 = vadd.f32 %v867_v53, %v813_v5  ;;  %v3948_v53 = vld [vmem:[#allocation7 + $0x50] sm:$0xff]  }
 0x212   :  { %3419 = vmatprep.subr.bf16.mxu1 %v3948_v53  ;;  %v3953_v53 = vld [vmem:[#allocation7 + $0x60] sm:$0xff]  }
 0x213   :  { %v869_v3 = vadd.f32 %v868_v9, %v814_v27  ;;  %v3945_v9 = vld [vmem:[#allocation7 + $0x90] sm:$0xff]  }
 0x214   :  { %3420 = vmatpush3.bf16.msra.mxu1 %v3949_v42  ;;  %3770 = vmatprep.subr.bf16.mxu0 %v3945_v9  ;;  %v3954_v42 = vld [vmem:[#allocation7 + $0x20] sm:$0xff]  }
 0x215   :  { %v870_v19 = vadd.f32 %v869_v3, %v815_v13  ;;  %v819_v13 = vmul.f32 %v4658_v4, %v4658_v4  ;;  %3771 = vmatpush3.bf16.msra.mxu0 %v3945_v9  ;;  %3421 = vmatprep.subr.bf16.mxu1 %v3950_v11  ;;  %v823_v9 = vmul.f32 %v4670_v12, %v4670_v12 }
 0x216   :  { %3772 = vmatprep.subr.bf16.mxu0 %v3952_v25  ;;  %v824_v11 = vmul.f32 %v4673_v15, %v4673_v15 }
 0x217   :  { %v871_v5 = vadd.f32 %v870_v19, %v816_v29  ;;  %v3951_v19 = vld [vmem:[#allocation7 + $0x18] sm:$0xff]  }
 0x218   :  { %3422 = vmatpush3.bf16.msra.mxu1 %v3951_v19  ;;  %v3958_v19 = vld [vmem:[#allocation7 + $0xa8] sm:$0xff]  }
 0x219   :  { %v872_v27 = vadd.f32 %v871_v5, %v817_v8  ;;  %v821_v8 = vmul.f32 %v4664_v2, %v4664_v2  ;;  %3773 = vmatpush3.bf16.msra.mxu0 %v3952_v25  ;;  %3423 = vmatprep.subr.bf16.mxu1 %v3953_v53  ;;  %v825_v25 = vmul.f32 %v4676_v10, %v4676_v10 }
 0x21a   :  { %3774 = vmatprep.subr.bf16.mxu0 %v3955_v7  ;;  %v826_v53 = vmul.f32 %v4679_v14, %v4679_v14 }
 0x21b   :  { %v873_v3 = vadd.f32 %v872_v27, %v818_v21  ;;  %v822_v21 = vmul.f32 %v4667_v6, %v4667_v6 }
 0x21c   :  { %3424 = vmatpush3.bf16.msra.mxu1 %v3954_v42  ;;  %v3961_v42 = vld [vmem:[#allocation7 + $0xb0] sm:$0xff]  }
 0x21d   :  { %v874_v29 = vadd.f32 %v873_v3, %v819_v13  ;;  %v3956_v3 = vld [vmem:[#allocation7 + $0x68] sm:$0xff]   ;;  %3775 = vmatpush3.bf16.msra.mxu0 %v3955_v7  ;;  %v827_v7 = vmul.f32 %v4682_v20, %v4682_v20 }
 0x21e   :  { %3425 = vmatprep.subr.bf16.mxu1 %v3956_v3  ;;  %3776 = vmatprep.subr.bf16.mxu0 %v3958_v19  ;;  %v828_v3 = vmul.f32 %v4685_v23, %v4685_v23 }
 0x21f   :  { %v875_v5 = vadd.f32 %v874_v29, %v820_v24  ;;  %v3957_v29 = vld [vmem:[#allocation7 + $0x28] sm:$0xff]  }
 0x220   :  { %3426 = vmatpush3.bf16.msra.mxu1 %v3957_v29  ;;  %v829_v29 = vmul.f32 %v4688_v18, %v4688_v18 }
 0x221   :  { %v876_v27 = vadd.f32 %v875_v5, %v821_v8  ;;  %v3959_v5 = vld [vmem:[#allocation7 + $0x70] sm:$0xff]   ;;  %3777 = vmatpush3.bf16.msra.mxu0 %v3958_v19 }
 0x222   :  { %3427 = vmatprep.subr.bf16.mxu1 %v3959_v5  ;;  %3778 = vmatprep.subr.bf16.mxu0 %v3961_v42  ;;  %v3964_v5 = vld [vmem:[#allocation7 + $0xb8] sm:$0xff]  }
 0x223   :  { %v877_v13 = vadd.f32 %v876_v27, %v822_v21  ;;  %v3960_v27 = vld [vmem:[#allocation7 + $0x30] sm:$0xff]  }
 0x224   :  { %3428 = vmatpush3.bf16.msra.mxu1 %v3960_v27  ;;  %v832_v27 = vmul.f32 %v4697_v31, %v4697_v31 }
 0x225   :  { %v878_v24 = vadd.f32 %v877_v13, %v823_v9  ;;  %v3962_v13 = vld [vmem:[#allocation7 + $0x78] sm:$0xff]   ;;  %3779 = vmatpush3.bf16.msra.mxu0 %v3961_v42 }
 0x226   :  { %3429 = vmatprep.subr.bf16.mxu1 %v3962_v13  ;;  %3780 = vmatprep.subr.bf16.mxu0 %v3964_v5  ;;  %v834_v13 = vmul.f32 %v4703_v30, %v4703_v30 }
 0x227   :  { %v879_v8 = vadd.f32 %v878_v24, %v824_v11  ;;  %v3963_v24 = vld [vmem:[#allocation7 + $0x38] sm:$0xff]  }
 0x228   :  { %3430 = vmatpush3.bf16.msra.mxu1 %v3963_v24 }
 0x229   :  { %v880_v21 = vadd.f32 %v879_v8, %v825_v25  ;;  %v830_v25 = vmul.f32 %v4691_v22, %v4691_v22  ;;  %3781 = vmatpush3.bf16.msra.mxu0 %v3964_v5  ;;  %v838_v5 = vmul.f32 %v4715_v43, %v4715_v43 }
 0x22b   :  { %v881_v9 = vadd.f32 %v880_v21, %v826_v53  ;;  %v831_v53 = vmul.f32 %v4694_v28, %v4694_v28 }
 0x22d   :  { %v882_v11 = vadd.f32 %v881_v9, %v827_v7  ;;  %v833_v7 = vmul.f32 %v4700_v26, %v4700_v26 }
 0x22f   :  { %v883_v19 = vadd.f32 %v882_v11, %v828_v3  ;;  %v835_v11 = vmul.f32 %v4706_v40, %v4706_v40 }
 0x231   :  { %v884_v8 = vadd.f32 %v883_v19, %v829_v29  ;;  %v836_v29 = vmul.f32 %v4709_v45, %v4709_v45 }
 0x233   :  { %v885_v21 = vadd.f32 %v884_v8, %v830_v25  ;;  %v837_v25 = vmul.f32 %v4712_v34, %v4712_v34 }
 0x235   :  { %v886_v42 = vadd.f32 %v885_v21, %v831_v53  ;;  %v839_v21 = vmul.f32 %v4718_v56, %v4718_v56 }
 0x237   :  { %v887_v9 = vadd.f32 %v886_v42, %v832_v27  ;;  %v840_v42 = vmul.f32 %v4721_v61, %v4721_v61 }
 0x239   :  { %v888_v3 = vadd.f32 %v887_v9, %v833_v7  ;;  %v841_v9 = vmul.f32 %v4724_v51, %v4724_v51 }
 0x23b   :  { %v889_v24 = vadd.f32 %v888_v3, %v834_v13  ;;  %v842_v3 = vmul.f32 %v4727_v59, %v4727_v59  ;;  %v917_v59 = vlaneseq }
 0x23d   :  { %v890_v19 = vadd.f32 %v889_v24, %v835_v11  ;;  %v843_v24 = vmul.f32 %v4730_v57, %v4730_v57 }
 0x23f   :  { %v891_v8 = vadd.f32 %v890_v19, %v836_v29  ;;  %v844_v19 = vmul.f32 %v4733_v33, %v4733_v33 }
 0x241   :  { %v892_v53 = vadd.f32 %v891_v8, %v837_v25  ;;  %v845_v8 = vmul.f32 %v4736_v41, %v4736_v41  ;;  %v5692_v41 = vld [vmem:[#allocation32_spill] sm:$0xff] }
 0x243   :  { %v893_v27 = vadd.f32 %v892_v53, %v838_v5  ;;  %v846_v53 = vmul.f32 %v4739_v49, %v4739_v49 }
 0x245   :  { %v894_v7 = vadd.f32 %v893_v27, %v839_v21  ;;  %v847_v27 = vmul.f32 %v4742_v0, %v4742_v0 }
 0x247   :  { %v895_v13 = vadd.f32 %v894_v7, %v840_v42  ;;  %v848_v7 = vmul.f32 %v4745_v1, %v4745_v1 }
 0x249   :  { %v896_v11 = vadd.f32 %v895_v13, %v841_v9  ;;  %v5690_v13 = vld [vmem:[#allocation24_spill] sm:$0xff] }
 0x24b   :  { %v897_v29 = vadd.f32 %v896_v11, %v842_v3  ;;  %v849_v3 = vmul.f32 %v5690_v13, %v5690_v13 }
 0x24d   :  { %v898_v25 = vadd.f32 %v897_v29, %v843_v24  ;;  %v5691_v24 = vld [vmem:[#allocation31_spill] sm:$0xff] }
 0x24e   :  { %v850_v29 = vmul.f32 %v5691_v24, %v5691_v24 }
 0x24f   :  { %v899_v5 = vadd.f32 %v898_v25, %v844_v19 }
 0x251   :  { %v900_v21 = vadd.f32 %v899_v5, %v845_v8  ;;  %v851_v8 = vmul.f32 %v5692_v41, %v5692_v41 }
 0x253   :  { %v901_v42 = vadd.f32 %v900_v21, %v846_v53 }
 0x255   :  { %v902_v9 = vadd.f32 %v901_v42, %v847_v27 }
 0x257   :  { %v903_v11 = vadd.f32 %v902_v9, %v848_v7  ;;  %v918_v7 = vshrl.u32 %v917_v59, 7  ;;  %v5696_v59 = vld [vmem:[#allocation25_spill] sm:$0xff] }
 0x259   :  { %v904_v19 = vadd.f32 %v903_v11, %v849_v3  ;;  %v676_v3 = vld [vmem:[%s5629_s2] sm:$0x1] }
 0x25b   :  { %v905_v25 = vadd.f32 %v904_v19, %v850_v29  ;;  %v4871_v29 = vsub.s32 0, %v918_v7 }
 0x25d   :  { %v906_v5 = vadd.f32 %v905_v25, %v851_v8  ;;  %5693 = vst [vmem:[#allocation24_spill] sm:$0xff] %v4871_v29 }
 0x25f   :  { %v907_v49 = vrot.slane %v906_v5, 4 }
 0x261   :  { %v908_v0 = vadd.f32 %v907_v49, %v906_v5 }
 0x263   :  { %v909_v53 = vrot.slane %v908_v0, 2 }
 0x265   :  { %v910_v21 = vadd.f32 %v909_v53, %v908_v0  ;;  %v5697_v0 = vld [vmem:[#allocation26_spill] sm:$0xff] }
 0x267   :  { %v911_v33 = vrot.slane %v910_v21, 1 }
 0x269   :  { %v912_v57 = vadd.f32 %v911_v33, %v910_v21 }
 0x26b   :  { %v913_v27 = vmul.f32 0.002232143, %v912_v57 }
 0x26d   :  { %v914_v42 = vadd.f32 1e-05, %v913_v27 }
 0x26f   :  { %4053 = vrsqrt.f32 %v914_v42  ;;  %v5698_v42 = vld [vmem:[#allocation27_spill] sm:$0xff] }
 0x279   :  { %v4054_v9 = vpop.eup %4053 }
 0x27a   :  { %v916_v11 = vmul.f32 %v4054_v9, %v676_v3 }
 0x27c   :  { %v4874_v19 = vrot.slane %v916_v11, %v4871_v29 }
 0x27e   :  { %v4878_v49 = vmul.f32 %v4874_v19, %v4745_v1  ;;  %v4882_v57 = vmul.f32 %v4874_v19, %v5690_v13  ;;  %v921_v33 = vmul.f32 %v4874_v19, %v5696_v59  ;;  %v922_v25 = vmul.f32 %v4874_v19, %v5697_v0 }
 0x27f   :  { %v923_v8 = vmul.f32 %v4874_v19, %v4595_v16  ;;  %v924_v5 = vmul.f32 %v4874_v19, %v4598_v17  ;;  %v925_v1 = vmul.f32 %v4874_v19, %v4601_v32  ;;  %v926_v53 = vmul.f32 %v4874_v19, %v4604_v35 }
 0x280   :  { %5694 = vst [vmem:[#allocation33_spill] sm:$0xff] %v4878_v49  ;;  %5695 = vst [vmem:[#allocation34_spill] sm:$0xff] %v4882_v57  ;;  %v927_v13 = vmul.f32 %v4874_v19, %v4607_v48  ;;  %v928_v21 = vmul.f32 %v4874_v19, %v4610_v37  ;;  %v929_v27 = vmul.f32 %v4874_v19, %v4613_v39 }
 0x281   :  { %v930_v16 = vmul.f32 %v4874_v19, %v4616_v36  ;;  %v931_v17 = vmul.f32 %v4874_v19, %v4619_v38  ;;  %v932_v32 = vmul.f32 %v4874_v19, %v4622_v44  ;;  %v933_v35 = vmul.f32 %v4874_v19, %v4625_v47 }
 0x282   :  { %v934_v48 = vmul.f32 %v4874_v19, %v5698_v42  ;;  %v935_v37 = vmul.f32 %v4874_v19, %v4631_v46  ;;  %v936_v39 = vmul.f32 %v4874_v19, %v4634_v52  ;;  %v937_v36 = vmul.f32 %v4874_v19, %v4637_v55  ;;  %v4933_v55 = vld [vmem:[%s5630_s3] ss:$0 sm:$0xff] }
 0x283   :  { %v938_v38 = vmul.f32 %v4874_v19, %v4640_v50  ;;  %v939_v44 = vmul.f32 %v4874_v19, %v4643_v54  ;;  %v940_v47 = vmul.f32 %v4874_v19, %v4646_v60  ;;  %v941_v7 = vmul.f32 %v4874_v19, %v4649_v63  ;;  %v5699_v54 = vld [vmem:[#allocation28_spill] sm:$0xff] }
 0x284   :  { %v942_v46 = vmul.f32 %v4874_v19, %v4652_v58  ;;  %v943_v52 = vmul.f32 %v4874_v19, %v4655_v62  ;;  %v944_v50 = vmul.f32 %v4874_v19, %v4658_v4  ;;  %v945_v60 = vmul.f32 %v4874_v19, %v5699_v54 }
 0x285   :  { %v4941_v63 = vmul.f32 %v4874_v19, %v4664_v2  ;;  %v4945_v58 = vmul.f32 %v4874_v19, %v4667_v6  ;;  %v4949_v62 = vmul.f32 %v4874_v19, %v4670_v12  ;;  %v4953_v9 = vmul.f32 %v4874_v19, %v4673_v15 }
 0x286   :  { %v4957_v4 = vmul.f32 %v4874_v19, %v4676_v10  ;;  %v4961_v2 = vmul.f32 %v4874_v19, %v4679_v14  ;;  %v4965_v6 = vmul.f32 %v4874_v19, %v4682_v20  ;;  %v4969_v12 = vmul.f32 %v4874_v19, %v4685_v23 }
 0x287   :  { %v4973_v15 = vmul.f32 %v4874_v19, %v4688_v18  ;;  %v4977_v10 = vmul.f32 %v4874_v19, %v4691_v22  ;;  %v991_v3 = vadd.f32 %v4933_v55, %v929_v27  ;;  %v992_v14 = vadd.f32 %v4933_v55, %v930_v16 }
 0x288   :  { %v993_v11 = vadd.f32 %v4933_v55, %v931_v17  ;;  %v994_v20 = vadd.f32 %v4933_v55, %v932_v32  ;;  %v4985_v23 = vmul.f32 %v4874_v19, %v4694_v28  ;;  %v4989_v18 = vmul.f32 %v4874_v19, %v4697_v31 }
 0x289   :  { %v4993_v22 = vmul.f32 %v4874_v19, %v4700_v26  ;;  %v4997_v59 = vmul.f32 %v4874_v19, %v4703_v30  ;;  %v983_v0 = vadd.f32 %v4933_v55, %v921_v33  ;;  %v984_v27 = vadd.f32 %v4933_v55, %v922_v25 }
 0x28a   :  { %v985_v16 = vadd.f32 %v4933_v55, %v923_v8  ;;  %v986_v28 = vadd.f32 %v4933_v55, %v924_v5  ;;  %v995_v17 = vadd.f32 %v4933_v55, %v933_v35  ;;  %v996_v31 = vadd.f32 %v4933_v55, %v934_v48 }
 0x28b   :  { %v997_v32 = vadd.f32 %v4933_v55, %v935_v37  ;;  %v998_v26 = vadd.f32 %v4933_v55, %v936_v39  ;;  %v1047_v42 = vmax.f32 %v991_v3, 0.0  ;;  %v1048_v54 = vmax.f32 %v992_v14, 0.0 }
 0x28c   :  { %v1049_v30 = vmax.f32 %v993_v11, 0.0  ;;  %v1050_v29 = vmax.f32 %v994_v20, 0.0  ;;  %v987_v33 = vadd.f32 %v4933_v55, %v925_v1  ;;  %v988_v25 = vadd.f32 %v4933_v55, %v926_v53 }
 0x28d   :  { %v989_v8 = vadd.f32 %v4933_v55, %v927_v13  ;;  %v990_v5 = vadd.f32 %v4933_v55, %v928_v21  ;;  %v999_v35 = vadd.f32 %v4933_v55, %v937_v36  ;;  %v1000_v48 = vadd.f32 %v4933_v55, %v938_v38 }
 0x28e   :  { %v1001_v37 = vadd.f32 %v4933_v55, %v939_v44  ;;  %v1002_v39 = vadd.f32 %v4933_v55, %v940_v47  ;;  %v1051_v3 = vmax.f32 %v995_v17, 0.0  ;;  %v1052_v14 = vmax.f32 %v996_v31, 0.0 }
 0x28f   :  { %v1053_v11 = vmax.f32 %v997_v32, 0.0  ;;  %v1054_v20 = vmax.f32 %v998_v26, 0.0  ;;  %v1003_v1 = vadd.f32 %v4933_v55, %v941_v7  ;;  %v1004_v53 = vadd.f32 %v4933_v55, %v942_v46 }
 0x290   :  { %v1099_v13 = vmax.f32 %v1047_v42, %v1048_v54  ;;  %v1100_v57 = vmax.f32 %v1049_v30, %v1050_v29  ;;  %v1043_v21 = vmax.f32 %v987_v33, 0.0  ;;  %v1044_v49 = vmax.f32 %v988_v25, 0.0 }
 0x291   :  { %v1045_v36 = vmax.f32 %v989_v8, 0.0  ;;  %v1046_v41 = vmax.f32 %v990_v5, 0.0  ;;  %v1005_v38 = vadd.f32 %v4933_v55, %v943_v52  ;;  %v1006_v44 = vadd.f32 %v4933_v55, %v944_v50 }
 0x292   :  { %v5020_v47 = vadd.f32 %v4933_v55, %v945_v60  ;;  %v1055_v17 = vmax.f32 %v999_v35, 0.0  ;;  %v1056_v31 = vmax.f32 %v1000_v48, 0.0  ;;  %v1057_v32 = vmax.f32 %v1001_v37, 0.0 }
 0x293   :  { %v1101_v26 = vmax.f32 %v1051_v3, %v1052_v14  ;;  %v1102_v7 = vmax.f32 %v1053_v11, %v1054_v20  ;;  %v5022_v24 = vpack.c.bf16 %v1100_v57, %v1099_v13  ;;  %v1039_v46 = vmax.f32 %v983_v0, 0.0 }
 0x294   :  { %v1040_v29 = vmax.f32 %v984_v27, 0.0  ;;  %v1041_v42 = vmax.f32 %v985_v16, 0.0  ;;  %v1058_v54 = vmax.f32 %v1002_v39, 0.0  ;;  %v1042_v30 = vmax.f32 %v986_v28, 0.0 }
 0x295   :  { %v1097_v33 = vmax.f32 %v1043_v21, %v1044_v49  ;;  %v1098_v25 = vmax.f32 %v1045_v36, %v1046_v41  ;;  %v1059_v52 = vmax.f32 %v1003_v1, 0.0  ;;  %v1060_v8 = vmax.f32 %v1004_v53, 0.0 }
 0x296   :  { %v1061_v50 = vmax.f32 %v1005_v38, 0.0  ;;  %v1095_v5 = vmax.f32 %v1039_v46, %v1040_v29  ;;  %v1062_v60 = vmax.f32 %v1006_v44, 0.0  ;;  %v1096_v51 = vmax.f32 %v1041_v42, %v1042_v30 }
 0x297   :  { %v1124_v35 = vpack.c.bf16 %v1098_v25, %v1097_v33  ;;  %v5024_v48 = vpack.c.bf16 %v1102_v7, %v1101_v26  ;;  %v1008_v57 = vadd.f32 %v4933_v55, %v4941_v63  ;;  %v1009_v0 = vadd.f32 %v4933_v55, %v4945_v58 }
 0x298   :  { %v1010_v27 = vadd.f32 %v4933_v55, %v4949_v62  ;;  %v1155_v41 = vrot.slane %v5022_v24, 4  ;;  %v1011_v49 = vadd.f32 %v4933_v55, %v4953_v9  ;;  %v1012_v16 = vadd.f32 %v4933_v55, %v4957_v4 }
 0x299   :  { %v1123_v28 = vpack.c.bf16 %v1096_v51, %v1095_v5  ;;  %v1153_v37 = vrot.slane %v1124_v35, 4  ;;  %v1013_v39 = vadd.f32 %v4933_v55, %v4961_v2  ;;  %v1014_v63 = vadd.f32 %v4933_v55, %v4965_v6 }
 0x29a   :  { %v1103_v58 = vmax.f32 %v1055_v17, %v1056_v31  ;;  %v1104_v3 = vmax.f32 %v1057_v32, %v1058_v54  ;;  %v1105_v14 = vmax.f32 %v1059_v52, %v1060_v8  ;;  %v1106_v9 = vmax.f32 %v1061_v50, %v1062_v60 }
 0x29b   :  { %v1152_v11 = vrot.slane %v1123_v28, 4  ;;  %1424 = vmatprep.mubr.bf16.mxu1 %v1123_v28  ;;  %v1157_v51 = vrot.slane %v5024_v48, 4  ;;  %v960_v4 = vmul.f32 %v4874_v19, %v4706_v40  ;;  %v961_v2 = vmul.f32 %v4874_v19, %v4709_v45 }
 0x29c   :  { %v962_v6 = vmul.f32 %v4874_v19, %v4712_v34  ;;  %v5054_v20 = vsel %vm1151_vm0, %v1153_v37, %v1155_v41  ;;  %v1063_v1 = vmax.f32 %v5020_v47, 0.0  ;;  %v1064_v53 = vmax.f32 %v1008_v57, 0.0 }
 0x29d   :  { %v1065_v13 = vmax.f32 %v1009_v0, 0.0  ;;  %3282 = vmatmul.mubr.msk.bf16.vlgmr.msra.gmra.mrb[0].mxu1 %vm5042_vm1, %v1152_v11  ;;  %v1154_v21 = vsel %vm1151_vm0, %v1152_v11, %v1153_v37  ;;  %v1066_v36 = vmax.f32 %v1010_v27, 0.0  ;;  %v1067_v40 = vmax.f32 %v1011_v49, 0.0 }
 0x29e   :  { %v1068_v38 = vmax.f32 %v1012_v16, 0.0  ;;  %1432 = vmatprep.mubr.bf16.mxu1 %v1124_v35  ;;  %3782 = vmatprep.mubr.bf16.mxu0 %v1154_v21  ;;  %v5060_v45 = vpack.c.bf16 %v1104_v3, %v1103_v58  ;;  %v1069_v34 = vmax.f32 %v1013_v39, 0.0  ;;  %v1070_v44 = vmax.f32 %v1014_v63, 0.0  ;;  %v5705_v39 = vld [vmem:[#allocation21_spill] sm:$0xff]  ;;  %v5706_v58 = vld [vmem:[#allocation23_spill] sm:$0xff] }
 0x29f   :  { %3783 = vmatmul.mubr.bf16.vlgmr.msra.gmra.mrb[56].mxu0 %v5054_v20  ;;  %v5064_v47 = vsel %vm1151_vm0, %v1155_v41, %v1157_v51  ;;  %v5066_v17 = vpack.c.bf16 %v1106_v9, %v1105_v14  ;;  %v963_v31 = vmul.f32 %v4874_v19, %v4715_v43  ;;  %v964_v32 = vmul.f32 %v4874_v19, %v4718_v56 }
 0x2a0   :  { %v1015_v26 = vadd.f32 %v4933_v55, %v4969_v12  ;;  %v1016_v7 = vadd.f32 %v4933_v55, %v4973_v15  ;;  %3786 = vmatprep.mubr.bf16.mxu0 %v5064_v47  ;;  %v1017_v46 = vadd.f32 %v4933_v55, %v4977_v10  ;;  %v1018_v29 = vadd.f32 %v4933_v55, %v4985_v23 }
 0x2a1   :  { %v1019_v43 = vadd.f32 %v4933_v55, %v4989_v18  ;;  %v1020_v56 = vadd.f32 %v4933_v55, %v4993_v22  ;;  %v1021_v12 = vadd.f32 %v4933_v55, %v4997_v59  ;;  %v1107_v42 = vmax.f32 %v1063_v1, %v1064_v53  ;;  %v5702_v18 = vld [vmem:[#allocation29_spill] sm:$0xff]  ;;  %v5703_v22 = vld [vmem:[#allocation30_spill] sm:$0xff]  ;;  %v5704_v59 = vld [vmem:[#allocation19_spill] sm:$0xff] }
 0x2a2   :  { %v1108_v54 = vmax.f32 %v1065_v13, %v1066_v36  ;;  %v1159_v15 = vrot.slane %v5060_v45, 4  ;;  %v1022_v30 = vadd.f32 %v4933_v55, %v960_v4  ;;  %v1109_v33 = vmax.f32 %v1067_v40, %v1068_v38  ;;  %v5707_v38 = vld [vmem:[#allocation20_spill] sm:$0xff] }
 0x2a3   :  { %v1110_v10 = vmax.f32 %v1069_v34, %v1070_v44  ;;  %v1161_v25 = vrot.slane %v5066_v17, 4  ;;  %v965_v23 = vmul.f32 %v4874_v19, %v4721_v61  ;;  %v966_v52 = vmul.f32 %v4874_v19, %v5702_v18  ;;  %v5708_v44 = vld [vmem:[#allocation22_spill] sm:$0xff] }
 0x2a4   :  { %v967_v8 = vmul.f32 %v4874_v19, %v5703_v22  ;;  %v968_v50 = vmul.f32 %v4874_v19, %v5704_v59  ;;  %v1071_v5 = vmax.f32 %v1015_v26, 0.0  ;;  %v1072_v60 = vmax.f32 %v1016_v7, 0.0  ;;  %v5710_v7 = vld [vmem:[#allocation32_spill] sm:$0xff]  ;;  %v5712_v22 = vld [vmem:[#allocation34_spill] sm:$0xff] }
 0x2a5   :  { %v1073_v35 = vmax.f32 %v1017_v46, 0.0  ;;  %v1074_v57 = vmax.f32 %v1018_v29, 0.0  ;;  %1433 = vmatmul.mubr.bf16.gmra.mrb[4].mxu1 %v1154_v21  ;;  %v1075_v0 = vmax.f32 %v1019_v43, 0.0  ;;  %v1076_v27 = vmax.f32 %v1020_v56, 0.0 }
 0x2a6   :  { %1440 = vmatprep.mubr.bf16.mxu1 %v5022_v24  ;;  %v5100_v61 = vsel %vm1151_vm0, %v1157_v51, %v1159_v15  ;;  %v5102_v41 = vpack.c.bf16 %v1108_v54, %v1107_v42  ;;  %v1077_v49 = vmax.f32 %v1021_v12, 0.0  ;;  %v1078_v16 = vmax.f32 %v1022_v30, 0.0 }
 0x2a7   :  { %3787 = vmatmul.mubr.bf16.gmra.mrb[60].mxu0 %v5100_v61  ;;  %v5106_v28 = vsel %vm1151_vm0, %v1159_v15, %v1161_v25  ;;  %v5108_v37 = vpack.c.bf16 %v1110_v10, %v1109_v33  ;;  %v969_v63 = vmul.f32 %v4874_v19, %v5705_v39  ;;  %v970_v24 = vmul.f32 %v4874_v19, %v5706_v58 }
 0x2a8   :  { %v1023_v3 = vadd.f32 %v4933_v55, %v961_v2  ;;  %v1024_v14 = vadd.f32 %v4933_v55, %v962_v6  ;;  %3790 = vmatprep.mubr.bf16.mxu0 %v5106_v28  ;;  %v1025_v9 = vadd.f32 %v4933_v55, %v963_v31  ;;  %v1026_v11 = vadd.f32 %v4933_v55, %v964_v32  ;;  %v5709_v32 = vld [vmem:[#allocation31_spill] sm:$0xff] }
 0x2a9   :  { %v1027_v51 = vadd.f32 %v4933_v55, %v965_v23  ;;  %v1028_v4 = vadd.f32 %v4933_v55, %v966_v52  ;;  %v1029_v1 = vadd.f32 %v4933_v55, %v967_v8  ;;  %v1111_v53 = vmax.f32 %v1071_v5, %v1072_v60 }
 0x2aa   :  { %v1112_v13 = vmax.f32 %v1073_v35, %v1074_v57  ;;  %v1163_v21 = vrot.slane %v5102_v41, 4  ;;  %v1030_v2 = vadd.f32 %v4933_v55, %v968_v50  ;;  %v1113_v36 = vmax.f32 %v1075_v0, %v1076_v27 }
 0x2ab   :  { %v1114_v6 = vmax.f32 %v1077_v49, %v1078_v16  ;;  %v1165_v40 = vrot.slane %v5108_v37, 4  ;;  %v971_v34 = vmul.f32 %v4874_v19, %v5707_v38  ;;  %v972_v31 = vmul.f32 %v4874_v19, %v5708_v44 }
 0x2ac   :  { %v975_v26 = vmul.f32 %v4874_v19, %v5709_v32  ;;  %v976_v46 = vmul.f32 %v4874_v19, %v5710_v7  ;;  %v1079_v29 = vmax.f32 %v1023_v3, 0.0  ;;  %v1080_v43 = vmax.f32 %v1024_v14, 0.0  ;;  %v5711_v19 = vld [vmem:[#allocation33_spill] sm:$0xff] }
 0x2ad   :  { %v1081_v56 = vmax.f32 %v1025_v9, 0.0  ;;  %v1082_v12 = vmax.f32 %v1026_v11, 0.0  ;;  %1441 = vmatmul.mubr.bf16.gmra.mrb[8].mxu1 %v5054_v20  ;;  %v1083_v42 = vmax.f32 %v1027_v51, 0.0  ;;  %v1084_v54 = vmax.f32 %v1028_v4, 0.0 }
 0x2ae   :  { %1448 = vmatprep.mubr.bf16.mxu1 %v5024_v48  ;;  %v1164_v15 = vsel %vm1151_vm0, %v1161_v25, %v1163_v21  ;;  %v1131_v30 = vpack.c.bf16 %v1112_v13, %v1111_v53  ;;  %v1085_v33 = vmax.f32 %v1029_v1, 0.0  ;;  %v1086_v10 = vmax.f32 %v1030_v2, 0.0 }
 0x2af   :  { %3791 = vmatmul.mubr.bf16.gmra.mrb[64].mxu0 %v1164_v15  ;;  %v1166_v23 = vsel %vm1151_vm0, %v1163_v21, %v1165_v40  ;;  %v1132_v18 = vpack.c.bf16 %v1114_v6, %v1113_v36  ;;  %v1035_v52 = vadd.f32 %v4933_v55, %v5711_v19  ;;  %v1036_v8 = vadd.f32 %v4933_v55, %v5712_v22 }
 0x2b0   :  { %3794 = vmatprep.mubr.bf16.mxu0 %v1166_v23  ;;  %v1031_v20 = vadd.f32 %v4933_v55, %v969_v63  ;;  %v1032_v48 = vadd.f32 %v4933_v55, %v970_v24  ;;  %v1033_v25 = vadd.f32 %v4933_v55, %v971_v34  ;;  %v1034_v59 = vadd.f32 %v4933_v55, %v972_v31 }
 0x2b1   :  { %v1037_v50 = vadd.f32 %v4933_v55, %v975_v26  ;;  %v1115_v5 = vmax.f32 %v1079_v29, %v1080_v43  ;;  %v1116_v60 = vmax.f32 %v1081_v56, %v1082_v12  ;;  %v1167_v35 = vrot.slane %v1131_v30, 4 }
 0x2b2   :  { %v1038_v57 = vadd.f32 %v4933_v55, %v976_v46  ;;  %v1117_v0 = vmax.f32 %v1083_v42, %v1084_v54  ;;  %v1118_v27 = vmax.f32 %v1085_v33, %v1086_v10  ;;  %v1169_v49 = vrot.slane %v1132_v18, 4 }
 0x2b3   :  { %v1091_v16 = vmax.f32 %v1035_v52, 0.0  ;;  %v1092_v39 = vmax.f32 %v1036_v8, 0.0  ;;  %v1087_v58 = vmax.f32 %v1031_v20, 0.0  ;;  %v1088_v63 = vmax.f32 %v1032_v48, 0.0 }
 0x2b4   :  { %v1089_v24 = vmax.f32 %v1033_v25, 0.0  ;;  %v1090_v3 = vmax.f32 %v1034_v59, 0.0  ;;  %v1168_v14 = vsel %vm1151_vm0, %v1165_v40, %v1167_v35  ;;  %v1133_v9 = vpack.c.bf16 %v1116_v60, %v1115_v5 }
 0x2b5   :  { %1449 = vmatmul.mubr.bf16.gmra.mrb[12].mxu1 %v5064_v47  ;;  %v1093_v11 = vmax.f32 %v1037_v50, 0.0  ;;  %v1094_v51 = vmax.f32 %v1038_v57, 0.0  ;;  %v1170_v55 = vsel %vm1151_vm0, %v1167_v35, %v1169_v49  ;;  %v1134_v4 = vpack.c.bf16 %v1118_v27, %v1117_v0 }
 0x2b6   :  { %1456 = vmatprep.mubr.bf16.mxu1 %v5060_v45  ;;  %v1119_v1 = vmax.f32 %v1087_v58, %v1088_v63  ;;  %v1120_v53 = vmax.f32 %v1089_v24, %v1090_v3  ;;  %v1171_v13 = vrot.slane %v1133_v9, 4  ;;  %v1121_v21 = vmax.f32 %v1091_v16, %v1092_v39 }
 0x2b7   :  { %3795 = vmatmul.mubr.bf16.gmra.mrb[68].mxu0 %v1168_v14  ;;  %v1122_v2 = vmax.f32 %v1093_v11, %v1094_v51  ;;  %v1173_v47 = vrot.slane %v1134_v4, 4 }
 0x2b8   :  { %3798 = vmatprep.mubr.bf16.mxu0 %v1170_v55  ;;  %v1172_v45 = vsel %vm1151_vm0, %v1169_v49, %v1171_v13  ;;  %v1135_v36 = vpack.c.bf16 %v1120_v53, %v1119_v1 }
 0x2b9   :  { %v1174_v6 = vsel %vm1151_vm0, %v1171_v13, %v1173_v47  ;;  %v1136_v40 = vpack.c.bf16 %v1122_v2, %v1121_v21 }
 0x2ba   :  { %v1175_v38 = vrot.slane %v1135_v36, 4 }
 0x2bb   :  { %v1177_v34 = vrot.slane %v1136_v40, 4 }
 0x2bc   :  { %v1176_v44 = vsel %vm1151_vm0, %v1173_v47, %v1175_v38 }
 0x2bd   :  { %1457 = vmatmul.mubr.bf16.gmra.mrb[16].mxu1 %v5100_v61  ;;  %v1178_v61 = vsel %vm1151_vm0, %v1175_v38, %v1177_v34 }
 0x2be   :  { %1464 = vmatprep.mubr.bf16.mxu1 %v5066_v17 }
 0x2bf   :  { %3799 = vmatmul.mubr.bf16.gmra.mrb[72].mxu0 %v1172_v45 }
 0x2c0   :  { %3802 = vmatprep.mubr.bf16.mxu0 %v1174_v6 }
 0x2c5   :  { %1465 = vmatmul.mubr.bf16.gmra.mrb[20].mxu1 %v5106_v28 }
 0x2c6   :  { %1472 = vmatprep.mubr.bf16.mxu1 %v5102_v41 }
 0x2c7   :  { %3803 = vmatmul.mubr.bf16.gmra.mrb[76].mxu0 %v1176_v44 }
 0x2c8   :  { %3806 = vmatprep.mubr.bf16.mxu0 %v1178_v61 }
 0x2cd   :  { %1473 = vmatmul.mubr.bf16.gmra.mrb[24].mxu1 %v1164_v15 }
 0x2ce   :  { %1480 = vmatprep.mubr.bf16.mxu1 %v5108_v37 }
 0x2cf   :  { %3807 = vmatmul.mubr.msk.bf16.gmra.mrb[80].mxu0 %vm1151_vm0, %v1177_v34 }
 0x2d5   :  { %1481 = vmatmul.mubr.bf16.gmra.mrb[28].mxu1 %v1166_v23 }
 0x2d6   :  { %1488 = vmatprep.mubr.bf16.mxu1 %v1131_v30 }
 0x2dd   :  { %1489 = vmatmul.mubr.bf16.gmra.mrb[32].mxu1 %v1168_v14 }
 0x2de   :  { %1496 = vmatprep.mubr.bf16.mxu1 %v1132_v18 }
 0x2e5   :  { %1497 = vmatmul.mubr.bf16.gmra.mrb[36].mxu1 %v1170_v55 }
 0x2e6   :  { %1504 = vmatprep.mubr.bf16.mxu1 %v1133_v9 }
 0x2ed   :  { %1505 = vmatmul.mubr.bf16.gmra.mrb[40].mxu1 %v1172_v45 }
 0x2ee   :  { %1512 = vmatprep.mubr.bf16.mxu1 %v1134_v4 }
 0x2f5   :  { %1513 = vmatmul.mubr.bf16.gmra.mrb[44].mxu1 %v1174_v6 }
 0x2f6   :  { %1520 = vmatprep.mubr.bf16.mxu1 %v1135_v36 }
 0x2fd   :  { %1521 = vmatmul.mubr.bf16.gmra.mrb[48].mxu1 %v1176_v44 }
 0x2fe   :  { %1528 = vmatprep.mubr.bf16.mxu1 %v1136_v40 }
 0x305   :  { %1529 = vmatmul.mubr.bf16.gmra.mrb[52].mxu1 %v1178_v61 }
 0x370   :  { %v3431_v17 = vpop.f32.mrb[0].mxu1 }
 0x371   :  { %v3432_v41 = vpop.f32.mrb[1].mxu1 }
 0x372   :  { %v3433_v28 = vadd.f32 %v3432_v41, %v3431_v17  ;;  %v3434_v31 = vpop.f32.mrb[2].mxu1  ;;  %v3784_v37 = vpop.f32.mrb[56].mxu0 }
 0x373   :  { %v3435_v32 = vpop.f32.mrb[3].mxu1  ;;  %v1571_v26 = vpop.f32.mrb[57].mxu0 }
 0x374   :  { %v3436_v7 = vadd.f32 %v3435_v32, %v3434_v31  ;;  %v5161_v46 = vadd.f32 %v3433_v28, %v1571_v26  ;;  %v3785_v29 = vpop.f32.mrb[58].mxu0 }
 0x375   :  { %v1574_v43 = vpop.f32.mrb[59].mxu0 }
 0x376   :  { %v5163_v56 = vadd.f32 %v3436_v7, %v1574_v43 }
 0x378   :  { %v3437_v12 = vpop.f32.mrb[4].mxu1  ;;  %v1684_v39 = vadd.f32 %v5163_v56, %v5161_v46 }
 0x379   :  { %v3438_v42 = vpop.f32.mrb[5].mxu1 }
 0x37a   :  { %v3439_v54 = vadd.f32 %v3438_v42, %v3437_v12  ;;  %v3440_v15 = vpop.f32.mrb[6].mxu1  ;;  %v3788_v30 = vpop.f32.mrb[60].mxu0 }
 0x37b   :  { %v3441_v33 = vpop.f32.mrb[7].mxu1  ;;  %v1587_v10 = vpop.f32.mrb[61].mxu0 }
 0x37c   :  { %v5165_v23 = vadd.f32 %v3784_v37, %v3439_v54  ;;  %v3442_v18 = vadd.f32 %v3441_v33, %v3440_v15  ;;  %v3789_v19 = vpop.f32.mrb[62].mxu0 }
 0x37d   :  { %v1590_v52 = vpop.f32.mrb[63].mxu0 }
 0x37e   :  { %v5167_v22 = vadd.f32 %v3785_v29, %v3442_v18  ;;  %v1685_v9 = vadd.f32 %v1684_v39, %v5165_v23 }
 0x380   :  { %v3443_v8 = vpop.f32.mrb[8].mxu1  ;;  %v1686_v53 = vadd.f32 %v1685_v9, %v5167_v22 }
 0x381   :  { %v3444_v20 = vpop.f32.mrb[9].mxu1 }
 0x382   :  { %v3445_v48 = vadd.f32 %v3444_v20, %v3443_v8  ;;  %v3446_v25 = vpop.f32.mrb[10].mxu1  ;;  %v3792_v59 = vpop.f32.mrb[64].mxu0 }
 0x383   :  { %v3447_v50 = vpop.f32.mrb[11].mxu1  ;;  %v1603_v5 = vpop.f32.mrb[65].mxu0 }
 0x384   :  { %v5169_v60 = vadd.f32 %v3445_v48, %v1587_v10  ;;  %v3448_v35 = vadd.f32 %v3447_v50, %v3446_v25  ;;  %v3793_v57 = vpop.f32.mrb[66].mxu0 }
 0x385   :  { %v1606_v0 = vpop.f32.mrb[67].mxu0 }
 0x386   :  { %v5171_v27 = vadd.f32 %v3448_v35, %v1590_v52  ;;  %v1687_v2 = vadd.f32 %v1686_v53, %v5169_v60 }
 0x388   :  { %v3449_v49 = vpop.f32.mrb[12].mxu1  ;;  %v1688_v17 = vadd.f32 %v1687_v2, %v5171_v27 }
 0x389   :  { %v3450_v16 = vpop.f32.mrb[13].mxu1 }
 0x38a   :  { %v3451_v58 = vadd.f32 %v3450_v16, %v3449_v49  ;;  %v3452_v63 = vpop.f32.mrb[14].mxu1  ;;  %v3796_v24 = vpop.f32.mrb[68].mxu0 }
 0x38b   :  { %v3453_v3 = vpop.f32.mrb[15].mxu1  ;;  %v1619_v14 = vpop.f32.mrb[69].mxu0 }
 0x38c   :  { %v5176_v11 = vadd.f32 %v3788_v30, %v3451_v58  ;;  %v3454_v51 = vadd.f32 %v3453_v3, %v3452_v63  ;;  %v3797_v55 = vpop.f32.mrb[70].mxu0 }
 0x38d   :  { %v1622_v4 = vpop.f32.mrb[71].mxu0 }
 0x38e   :  { %v5178_v1 = vadd.f32 %v3789_v19, %v3454_v51  ;;  %v1689_v28 = vadd.f32 %v1688_v17, %v5176_v11 }
 0x390   :  { %v3455_v13 = vpop.f32.mrb[16].mxu1  ;;  %v1690_v12 = vadd.f32 %v1689_v28, %v5178_v1 }
 0x391   :  { %v3456_v21 = vpop.f32.mrb[17].mxu1 }
 0x392   :  { %v3457_v47 = vadd.f32 %v3456_v21, %v3455_v13  ;;  %v3458_v45 = vpop.f32.mrb[18].mxu1  ;;  %v5182_v36 = vpop.f32.mrb[72].mxu0 }
 0x393   :  { %v3459_v6 = vpop.f32.mrb[19].mxu1  ;;  %v1635_v40 = vpop.f32.mrb[73].mxu0 }
 0x394   :  { %v5184_v38 = vadd.f32 %v3457_v47, %v1603_v5  ;;  %v3460_v34 = vadd.f32 %v3459_v6, %v3458_v45  ;;  %v5186_v44 = vpop.f32.mrb[74].mxu0 }
 0x395   :  { %v1638_v61 = vpop.f32.mrb[75].mxu0 }
 0x396   :  { %v5189_v41 = vadd.f32 %v3460_v34, %v1606_v0  ;;  %v1691_v33 = vadd.f32 %v1690_v12, %v5184_v38 }
 0x398   :  { %v3461_v31 = vpop.f32.mrb[20].mxu1  ;;  %v1692_v52 = vadd.f32 %v1691_v33, %v5189_v41 }
 0x399   :  { %v3462_v37 = vpop.f32.mrb[21].mxu1 }
 0x39a   :  { %v3463_v32 = vadd.f32 %v3462_v37, %v3461_v31  ;;  %v3464_v26 = vpop.f32.mrb[22].mxu1  ;;  %v5192_v7 = vpop.f32.mrb[76].mxu0 }
 0x39b   :  { %v3465_v29 = vpop.f32.mrb[23].mxu1  ;;  %v5194_v43 = vpop.f32.mrb[77].mxu0 }
 0x39c   :  { %v5197_v42 = vadd.f32 %v3792_v59, %v3463_v32  ;;  %v3466_v54 = vadd.f32 %v3465_v29, %v3464_v26  ;;  %v5199_v15 = vpop.f32.mrb[78].mxu0 }
 0x39d   :  { %v5201_v30 = vpop.f32.mrb[79].mxu0 }
 0x39e   :  { %v5204_v10 = vadd.f32 %v3793_v57, %v3466_v54  ;;  %v1693_v50 = vadd.f32 %v1692_v52, %v5197_v42  ;;  %v3965_v52 = vld [vmem:[#allocation8 + $0x40] sm:$0xff]  }
 0x39f   :  { %3537 = vmatprep.subr.bf16.mxu1 %v3965_v52 }
 0x3a0   :  { %v3467_v18 = vpop.f32.mrb[24].mxu1  ;;  %v1694_v16 = vadd.f32 %v1693_v50, %v5204_v10 }
 0x3a1   :  { %v3468_v19 = vpop.f32.mrb[25].mxu1 }
 0x3a2   :  { %v3469_v8 = vadd.f32 %v3468_v19, %v3467_v18  ;;  %v3470_v20 = vpop.f32.mrb[26].mxu1  ;;  %v5207_v48 = vpop.f32.mrb[80].mxu0 }
 0x3a3   :  { %v3471_v25 = vpop.f32.mrb[27].mxu1  ;;  %v5209_v59 = vpop.f32.mrb[81].mxu0 }
 0x3a4   :  { %v5212_v5 = vadd.f32 %v3469_v8, %v1619_v14  ;;  %v3472_v35 = vadd.f32 %v3471_v25, %v3470_v20  ;;  %v5214_v0 = vpop.f32.mrb[82].mxu0  ;;  %v3966_v8 = vld [vmem:[#allocation8] sm:$0xff]  }
 0x3a5   :  { %v5216_v57 = vpop.f32.mrb[83].mxu0  ;;  %v3975_v25 = vld [vmem:[#allocation8 + $0x80] sm:$0xff]   ;;  %3538 = vmatpush3.bf16.msra.mxu1 %v3966_v8 }
 0x3a6   :  { %v5218_v49 = vadd.f32 %v3472_v35, %v1622_v4  ;;  %v1695_v63 = vadd.f32 %v1694_v16, %v5212_v5  ;;  %v4231_v35 = vmov 0.0  }
 0x3a7   :  { %3810 = vmatprep.subr.bf16.mxu0 %v4231_v35  ;;  %3826 = vmatprep.mubr.msk.bf16.mxu0 %vm4232_vm2, %v4231_v35 }
 0x3a8   :  { %v3473_v39 = vpop.f32.mrb[28].mxu1  ;;  %v1696_v13 = vadd.f32 %v1695_v63, %v5218_v49  ;;  %3811 = vmatpush3.bf16.msra.mxu0 %v3975_v25  ;;  %v3968_v63 = vld [vmem:[#allocation8 + $0x8] sm:$0xff]  }
 0x3a9   :  { %v3474_v58 = vpop.f32.mrb[29].mxu1  ;;  %3812 = vmatprep.subr.bf16.mxu0 %v4231_v35 }
 0x3aa   :  { %v3475_v3 = vadd.f32 %v3474_v58, %v3473_v39  ;;  %v3476_v9 = vpop.f32.mrb[30].mxu1  ;;  %v3967_v39 = vld [vmem:[#allocation8 + $0x48] sm:$0xff]  }
 0x3ab   :  { %v3477_v51 = vpop.f32.mrb[31].mxu1  ;;  %3539 = vmatprep.subr.bf16.mxu1 %v3967_v39  ;;  %v3984_v39 = vld [vmem:[#allocation8 + $0xa8] sm:$0xff]  }
 0x3ac   :  { %v5222_v53 = vadd.f32 %v3796_v24, %v3475_v3  ;;  %v3478_v14 = vadd.f32 %v3477_v51, %v3476_v9  ;;  %v3976_v9 = vld [vmem:[#allocation8 + $0x88] sm:$0xff]   ;;  %3540 = vmatpush3.bf16.msra.mxu1 %v3968_v63 }
 0x3ad   :  { %3813 = vmatpush3.bf16.msra.mxu0 %v3976_v9  ;;  %v3985_v9 = vld [vmem:[#allocation8 + $0x78] sm:$0xff]  }
 0x3ae   :  { %v5225_v21 = vadd.f32 %v3797_v55, %v3478_v14  ;;  %v1697_v2 = vadd.f32 %v1696_v13, %v5222_v53  ;;  %v3969_v13 = vld [vmem:[#allocation8 + $0x50] sm:$0xff]   ;;  %3814 = vmatprep.subr.bf16.mxu0 %v4231_v35 }
 0x3af   :  { %3541 = vmatprep.subr.bf16.mxu1 %v3969_v13 }
 0x3b0   :  { %v3479_v4 = vpop.f32.mrb[32].mxu1  ;;  %v1698_v17 = vadd.f32 %v1697_v2, %v5225_v21  ;;  %v3970_v2 = vld [vmem:[#allocation8 + $0x10] sm:$0xff]  }
 0x3b1   :  { %v3480_v47 = vpop.f32.mrb[33].mxu1  ;;  %3542 = vmatpush3.bf16.msra.mxu1 %v3970_v2 }
 0x3b2   :  { %v3481_v45 = vadd.f32 %v3480_v47, %v3479_v4  ;;  %v3482_v6 = vpop.f32.mrb[34].mxu1 }
 0x3b3   :  { %v3483_v34 = vpop.f32.mrb[35].mxu1 }
 0x3b4   :  { %v5229_v28 = vadd.f32 %v3481_v45, %v1635_v40  ;;  %v3484_v31 = vadd.f32 %v3483_v34, %v3482_v6 }
 0x3b6   :  { %v1699_v24 = vadd.f32 %v1698_v17, %v5229_v28  ;;  %v5232_v37 = vadd.f32 %v3484_v31, %v1638_v61  ;;  %v3971_v17 = vld [vmem:[#allocation8 + $0x58] sm:$0xff]  }
 0x3b7   :  { %3543 = vmatprep.subr.bf16.mxu1 %v3971_v17 }
 0x3b8   :  { %v1700_v32 = vadd.f32 %v1699_v24, %v5232_v37  ;;  %v3485_v55 = vpop.f32.mrb[36].mxu1  ;;  %v3972_v24 = vld [vmem:[#allocation8 + $0x18] sm:$0xff]  }
 0x3b9   :  { %v3486_v26 = vpop.f32.mrb[37].mxu1  ;;  %3544 = vmatpush3.bf16.msra.mxu1 %v3972_v24 }
 0x3ba   :  { %v3487_v29 = vadd.f32 %v3486_v26, %v3485_v55  ;;  %v3488_v12 = vpop.f32.mrb[38].mxu1  ;;  %v3980_v55 = vld [vmem:[#allocation8 + $0x98] sm:$0xff]  }
 0x3bb   :  { %v3489_v54 = vpop.f32.mrb[39].mxu1 }
 0x3bc   :  { %v5236_v33 = vadd.f32 %v5182_v36, %v3487_v29  ;;  %v3490_v18 = vadd.f32 %v3489_v54, %v3488_v12  ;;  %v3973_v12 = vld [vmem:[#allocation8 + $0x60] sm:$0xff]  }
 0x3bd   :  { %v3974_v54 = vld [vmem:[#allocation8 + $0x20] sm:$0xff]   ;;  %3545 = vmatprep.subr.bf16.mxu1 %v3973_v12 }
 0x3be   :  { %v1701_v19 = vadd.f32 %v1700_v32, %v5236_v33  ;;  %v5240_v40 = vadd.f32 %v5186_v44, %v3490_v18  ;;  %3546 = vmatpush3.bf16.msra.mxu1 %v3974_v54 }
 0x3c0   :  { %v1702_v61 = vadd.f32 %v1701_v19, %v5240_v40  ;;  %v3491_v20 = vpop.f32.mrb[40].mxu1 }
 0x3c1   :  { %v3492_v50 = vpop.f32.mrb[41].mxu1 }
 0x3c2   :  { %v3493_v36 = vadd.f32 %v3492_v50, %v3491_v20  ;;  %v3494_v16 = vpop.f32.mrb[42].mxu1  ;;  %v3977_v20 = vld [vmem:[#allocation8 + $0x68] sm:$0xff]  }
 0x3c3   :  { %v3495_v58 = vpop.f32.mrb[43].mxu1  ;;  %v3978_v50 = vld [vmem:[#allocation8 + $0x28] sm:$0xff]   ;;  %3547 = vmatprep.subr.bf16.mxu1 %v3977_v20 }
 0x3c4   :  { %v5246_v44 = vadd.f32 %v3493_v36, %v5194_v43  ;;  %v3496_v3 = vadd.f32 %v3495_v58, %v3494_v16  ;;  %v3979_v43 = vld [vmem:[#allocation8 + $0x90] sm:$0xff]   ;;  %3548 = vmatpush3.bf16.msra.mxu1 %v3978_v50 }
 0x3c5   :  { %3815 = vmatpush3.bf16.msra.mxu0 %v3979_v43  ;;  %v3982_v58 = vld [vmem:[#allocation8 + $0x30] sm:$0xff]  }
 0x3c6   :  { %v1703_v51 = vadd.f32 %v1702_v61, %v5246_v44  ;;  %v5250_v14 = vadd.f32 %v3496_v3, %v5201_v30  ;;  %3816 = vmatprep.subr.bf16.mxu0 %v4231_v35 }
 0x3c8   :  { %v1704_v4 = vadd.f32 %v1703_v51, %v5250_v14  ;;  %v3497_v47 = vpop.f32.mrb[44].mxu1  ;;  %v3987_v51 = vld [vmem:[#allocation8 + $0xb0] sm:$0xff]  }
 0x3c9   :  { %v3498_v45 = vpop.f32.mrb[45].mxu1  ;;  %3817 = vmatpush3.bf16.msra.mxu0 %v3980_v55 }
 0x3ca   :  { %v3499_v6 = vadd.f32 %v3498_v45, %v3497_v47  ;;  %v3500_v34 = vpop.f32.mrb[46].mxu1  ;;  %3818 = vmatprep.subr.bf16.mxu0 %v4231_v35  ;;  %v3986_v47 = vld [vmem:[#allocation8 + $0x38] sm:$0xff]  }
 0x3cb   :  { %v3501_v31 = vpop.f32.mrb[47].mxu1  ;;  %v3988_v45 = vld [vmem:[#allocation8 + $0xb8] sm:$0xff]  }
 0x3cc   :  { %v5256_v30 = vadd.f32 %v5192_v7, %v3499_v6  ;;  %v3502_v32 = vadd.f32 %v3501_v31, %v3500_v34  ;;  %v3983_v7 = vld [vmem:[#allocation8 + $0xa0] sm:$0xff]  }
 0x3cd   :  { %3819 = vmatpush3.bf16.msra.mxu0 %v3983_v7 }
 0x3ce   :  { %v1705_v26 = vadd.f32 %v1704_v4, %v5256_v30  ;;  %v5260_v29 = vadd.f32 %v5199_v15, %v3502_v32  ;;  %v3981_v15 = vld [vmem:[#allocation8 + $0x70] sm:$0xff]   ;;  %3820 = vmatprep.subr.bf16.mxu0 %v4231_v35 }
 0x3cf   :  { %3549 = vmatprep.subr.bf16.mxu1 %v3981_v15 }
 0x3d0   :  { %v1706_v18 = vadd.f32 %v1705_v26, %v5260_v29  ;;  %v3503_v19 = vpop.f32.mrb[48].mxu1  ;;  %3550 = vmatpush3.bf16.msra.mxu1 %v3982_v58 }
 0x3d1   :  { %v3504_v52 = vpop.f32.mrb[49].mxu1  ;;  %3821 = vmatpush3.bf16.msra.mxu0 %v3984_v39  ;;  %3551 = vmatprep.subr.bf16.mxu1 %v3985_v9 }
 0x3d2   :  { %v3505_v8 = vadd.f32 %v3504_v52, %v3503_v19  ;;  %v3506_v61 = vpop.f32.mrb[50].mxu1  ;;  %3822 = vmatprep.subr.bf16.mxu0 %v4231_v35 }
 0x3d3   :  { %v3507_v25 = vpop.f32.mrb[51].mxu1 }
 0x3d4   :  { %v1668_v36 = vadd.f32 %v3505_v8, %v5209_v59  ;;  %v3508_v16 = vadd.f32 %v3507_v25, %v3506_v61  ;;  %3552 = vmatpush3.bf16.msra.mxu1 %v3986_v47 }
 0x3d5   :  { %3823 = vmatpush3.bf16.msra.mxu0 %v3987_v51 }
 0x3d6   :  { %v1707_v63 = vadd.f32 %v1706_v18, %v1668_v36  ;;  %v1671_v3 = vadd.f32 %v3508_v16, %v5216_v57  ;;  %3824 = vmatprep.subr.bf16.mxu0 %v4231_v35 }
 0x3d8   :  { %v1708_v13 = vadd.f32 %v1707_v63, %v1671_v3  ;;  %v3509_v2 = vpop.f32.mrb[52].mxu1 }
 0x3d9   :  { %v3510_v4 = vpop.f32.mrb[53].mxu1  ;;  %3825 = vmatpush3.bf16.msra.mxu0 %v3988_v45 }
 0x3da   :  { %v3511_v59 = vadd.f32 %v3510_v4, %v3509_v2  ;;  %v3512_v43 = vpop.f32.mrb[54].mxu1 }
 0x3db   :  { %v3513_v6 = vpop.f32.mrb[55].mxu1 }
 0x3dc   :  { %v1676_v57 = vadd.f32 %v5207_v48, %v3511_v59  ;;  %v3514_v34 = vadd.f32 %v3513_v6, %v3512_v43 }
 0x3de   :  { %v1709_v17 = vadd.f32 %v1708_v13, %v1676_v57  ;;  %v1679_v31 = vadd.f32 %v5214_v0, %v3514_v34 }
 0x3e0   :  { %v1710_v24 = vadd.f32 %v1709_v17, %v1679_v31 }
 0x3e2   :  { %v1711_v32 = vrot.slane %v1710_v24, 4 }
 0x3e4   :  { %v1712_v55 = vadd.f32 %v1711_v32, %v1710_v24 }
 0x3e6   :  { %v1713_v26 = vrot.slane %v1712_v55, 2 }
 0x3e8   :  { %v1714_v12 = vadd.f32 %v1713_v26, %v1712_v55 }
 0x3ea   :  { %v1715_v54 = vrot.slane %v1714_v12, 1 }
 0x3ec   :  { %v1716_v18 = vadd.f32 %v1715_v54, %v1714_v12 }
 0x3ee   :  { %v1717_v19 = vmul.f32 0.004464286, %v1716_v18 }
 0x3f0   :  { %v5274_v48 = vsub.f32 %v5161_v46, %v1717_v19  ;;  %v5277_v7 = vsub.f32 %v5163_v56, %v1717_v19  ;;  %v5280_v0 = vsub.f32 %v5229_v28, %v1717_v19  ;;  %v5283_v52 = vsub.f32 %v5232_v37, %v1717_v19 }
 0x3f1   :  { %v5286_v8 = vsub.f32 %v5236_v33, %v1717_v19  ;;  %v5289_v61 = vsub.f32 %v5240_v40, %v1717_v19  ;;  %v5292_v20 = vsub.f32 %v5246_v44, %v1717_v19  ;;  %v5295_v46 = vsub.f32 %v5250_v14, %v1717_v19 }
 0x3f2   :  { %v5298_v56 = vsub.f32 %v5256_v30, %v1717_v19  ;;  %v5301_v28 = vsub.f32 %v5260_v29, %v1717_v19  ;;  %v5303_v37 = vsub.f32 %v1668_v36, %v1717_v19  ;;  %v5305_v25 = vsub.f32 %v1671_v3, %v1717_v19 }
 0x3f3   :  { %v5307_v33 = vsub.f32 %v1676_v57, %v1717_v19  ;;  %v5309_v40 = vsub.f32 %v1679_v31, %v1717_v19  ;;  %v5312_v44 = vsub.f32 %v5165_v23, %v1717_v19  ;;  %v1746_v14 = vmul.f32 %v5274_v48, %v5274_v48 }
 0x3f4   :  { %v1747_v30 = vmul.f32 %v5277_v7, %v5277_v7  ;;  %v5319_v29 = vsub.f32 %v5167_v22, %v1717_v19  ;;  %v5322_v50 = vsub.f32 %v5169_v60, %v1717_v19  ;;  %v5327_v16 = vsub.f32 %v5171_v27, %v1717_v19 }
 0x3f5   :  { %v1748_v15 = vmul.f32 %v5312_v44, %v5312_v44  ;;  %v5332_v58 = vsub.f32 %v5176_v11, %v1717_v19  ;;  %v5337_v60 = vsub.f32 %v5178_v1, %v1717_v19  ;;  %v5342_v27 = vsub.f32 %v5184_v38, %v1717_v19 }
 0x3f6   :  { %v1774_v36 = vadd.f32 %v1747_v30, %v1746_v14  ;;  %v1749_v23 = vmul.f32 %v5319_v29, %v5319_v29  ;;  %v1750_v22 = vmul.f32 %v5322_v50, %v5322_v50  ;;  %v1751_v3 = vmul.f32 %v5327_v16, %v5327_v16 }
 0x3f7   :  { %v1752_v51 = vmul.f32 %v5332_v58, %v5332_v58  ;;  %v5347_v11 = vsub.f32 %v5189_v41, %v1717_v19  ;;  %v1753_v2 = vmul.f32 %v5337_v60, %v5337_v60  ;;  %v5352_v1 = vsub.f32 %v5197_v42, %v1717_v19 }
 0x3f8   :  { %v1775_v39 = vadd.f32 %v1774_v36, %v1748_v15  ;;  %v1754_v47 = vmul.f32 %v5342_v27, %v5342_v27  ;;  %v5357_v38 = vsub.f32 %v5204_v10, %v1717_v19  ;;  %v5362_v41 = vsub.f32 %v5212_v5, %v1717_v19 }
 0x3f9   :  { %v1755_v43 = vmul.f32 %v5347_v11, %v5347_v11  ;;  %v1756_v6 = vmul.f32 %v5352_v1, %v5352_v1  ;;  %v5367_v42 = vsub.f32 %v5218_v49, %v1717_v19  ;;  %v5372_v10 = vsub.f32 %v5222_v53, %v1717_v19 }
 0x3fa   :  { %v1776_v63 = vadd.f32 %v1775_v39, %v1749_v23  ;;  %v1757_v34 = vmul.f32 %v5357_v38, %v5357_v38  ;;  %v1758_v31 = vmul.f32 %v5362_v41, %v5362_v41  ;;  %v5377_v5 = vsub.f32 %v5225_v21, %v1717_v19 }
 0x3fb   :  { %v1759_v32 = vmul.f32 %v5367_v42, %v5367_v42  ;;  %v1760_v49 = vmul.f32 %v5372_v10, %v5372_v10  ;;  %v1762_v54 = vmul.f32 %v5280_v0, %v5280_v0  ;;  %v1763_v21 = vmul.f32 %v5283_v52, %v5283_v52 }
 0x3fc   :  { %v1777_v9 = vadd.f32 %v1776_v63, %v1750_v22  ;;  %v1761_v12 = vmul.f32 %v5377_v5, %v5377_v5  ;;  %v1764_v14 = vmul.f32 %v5286_v8, %v5286_v8  ;;  %v1765_v15 = vmul.f32 %v5289_v61, %v5289_v61 }
 0x3fd   :  { %v1766_v23 = vmul.f32 %v5292_v20, %v5292_v20  ;;  %v1767_v22 = vmul.f32 %v5295_v46, %v5295_v46 }
 0x3fe   :  { %v1778_v13 = vadd.f32 %v1777_v9, %v1751_v3  ;;  %v1768_v3 = vmul.f32 %v5298_v56, %v5298_v56 }
 0x400   :  { %v1779_v4 = vadd.f32 %v1778_v13, %v1752_v51  ;;  %v1769_v51 = vmul.f32 %v5301_v28, %v5301_v28 }
 0x402   :  { %v1780_v59 = vadd.f32 %v1779_v4, %v1753_v2  ;;  %v1770_v2 = vmul.f32 %v5303_v37, %v5303_v37 }
 0x404   :  { %v1781_v45 = vadd.f32 %v1780_v59, %v1754_v47  ;;  %v1771_v47 = vmul.f32 %v5305_v25, %v5305_v25 }
 0x406   :  { %v1782_v57 = vadd.f32 %v1781_v45, %v1755_v43  ;;  %v1772_v43 = vmul.f32 %v5307_v33, %v5307_v33 }
 0x408   :  { %v1783_v17 = vadd.f32 %v1782_v57, %v1756_v6  ;;  %v1773_v6 = vmul.f32 %v5309_v40, %v5309_v40 }
 0x40a   :  { %v1784_v24 = vadd.f32 %v1783_v17, %v1757_v34 }
 0x40c   :  { %v1785_v55 = vadd.f32 %v1784_v24, %v1758_v31 }
 0x40e   :  { %v1786_v26 = vadd.f32 %v1785_v55, %v1759_v32 }
 0x410   :  { %v1787_v53 = vadd.f32 %v1786_v26, %v1760_v49 }
 0x412   :  { %v1788_v18 = vadd.f32 %v1787_v53, %v1761_v12  ;;  %v1682_v53 = vld [vmem:[%s5632_s5] sm:$0x1] }
 0x414   :  { %v1789_v19 = vadd.f32 %v1788_v18, %v1762_v54 }
 0x416   :  { %v1790_v30 = vadd.f32 %v1789_v19, %v1763_v21  ;;  %v5713_v21 = vld [vmem:[#allocation24_spill] sm:$0xff] }
 0x418   :  { %v1791_v36 = vadd.f32 %v1790_v30, %v1764_v14  ;;  %v5418_v14 = vld [vmem:[%s5633_s6] ss:$0 sm:$0xff] }
 0x41a   :  { %v1792_v39 = vadd.f32 %v1791_v36, %v1765_v15 }
 0x41c   :  { %v1793_v63 = vadd.f32 %v1792_v39, %v1766_v23 }
 0x41e   :  { %v1794_v9 = vadd.f32 %v1793_v63, %v1767_v22 }
 0x420   :  { %v1795_v13 = vadd.f32 %v1794_v9, %v1768_v3 }
 0x422   :  { %v1796_v4 = vadd.f32 %v1795_v13, %v1769_v51 }
 0x424   :  { %v1797_v59 = vadd.f32 %v1796_v4, %v1770_v2 }
 0x426   :  { %v1798_v45 = vadd.f32 %v1797_v59, %v1771_v47 }
 0x428   :  { %v1799_v57 = vadd.f32 %v1798_v45, %v1772_v43 }
 0x42a   :  { %v1800_v34 = vadd.f32 %v1799_v57, %v1773_v6 }
 0x42c   :  { %v1801_v17 = vrot.slane %v1800_v34, 4 }
 0x42e   :  { %v1802_v31 = vadd.f32 %v1801_v17, %v1800_v34 }
 0x430   :  { %v1803_v24 = vrot.slane %v1802_v31, 2 }
 0x432   :  { %v1804_v32 = vadd.f32 %v1803_v24, %v1802_v31 }
 0x434   :  { %v1805_v55 = vrot.slane %v1804_v32, 1 }
 0x436   :  { %v1806_v49 = vadd.f32 %v1805_v55, %v1804_v32 }
 0x438   :  { %v1807_v26 = vmul.f32 0.004464286, %v1806_v49 }
 0x43a   :  { %v1808_v12 = vadd.f32 1e-05, %v1807_v26 }
 0x43c   :  { %4055 = vrsqrt.f32 %v1808_v12 }
 0x446   :  { %v4056_v54 = vpop.eup %4055 }
 0x447   :  { %v1810_v18 = vmul.f32 %v4056_v54, %v1682_v53 }
 0x449   :  { %v5413_v19 = vrot.slane %v1810_v18, %v5713_v21 }
 0x44b   :  { %v1815_v30 = vmul.f32 %v5413_v19, %v5274_v48  ;;  %v1816_v15 = vmul.f32 %v5413_v19, %v5277_v7  ;;  %v1817_v36 = vmul.f32 %v5413_v19, %v5312_v44  ;;  %v1818_v23 = vmul.f32 %v5413_v19, %v5319_v29 }
 0x44c   :  { %v1819_v39 = vmul.f32 %v5413_v19, %v5322_v50  ;;  %v1820_v22 = vmul.f32 %v5413_v19, %v5327_v16  ;;  %v1821_v63 = vmul.f32 %v5413_v19, %v5332_v58  ;;  %v1822_v44 = vmul.f32 %v5413_v19, %v5337_v60 }
 0x44d   :  { %v1849_v48 = vadd.f32 %v5418_v14, %v1815_v30  ;;  %v1850_v3 = vadd.f32 %v5418_v14, %v1816_v15  ;;  %v1851_v7 = vadd.f32 %v5418_v14, %v1817_v36  ;;  %v1852_v29 = vadd.f32 %v5418_v14, %v1818_v23 }
 0x44e   :  { %v1853_v9 = vadd.f32 %v5418_v14, %v1819_v39  ;;  %v1854_v50 = vadd.f32 %v5418_v14, %v1820_v22  ;;  %v1855_v16 = vadd.f32 %v5418_v14, %v1821_v63  ;;  %v1856_v2 = vadd.f32 %v5418_v14, %v1822_v44 }
 0x44f   :  { %v1877_v51 = vmax.f32 %v1849_v48, 0.0  ;;  %v1878_v13 = vmax.f32 %v1850_v3, 0.0  ;;  %v1879_v58 = vmax.f32 %v1851_v7, 0.0  ;;  %v1880_v4 = vmax.f32 %v1852_v29, 0.0 }
 0x450   :  { %v1881_v47 = vmax.f32 %v1853_v9, 0.0  ;;  %v1882_v59 = vmax.f32 %v1854_v50, 0.0  ;;  %v1883_v43 = vmax.f32 %v1855_v16, 0.0  ;;  %v1884_v6 = vmax.f32 %v1856_v2, 0.0 }
 0x451   :  { %v1905_v45 = vmax.f32 %v1877_v51, %v1878_v13  ;;  %v1823_v60 = vmul.f32 %v5413_v19, %v5342_v27  ;;  %v1824_v57 = vmul.f32 %v5413_v19, %v5347_v11  ;;  %v1906_v34 = vmax.f32 %v1879_v58, %v1880_v4 }
 0x452   :  { %v1907_v17 = vmax.f32 %v1881_v47, %v1882_v59  ;;  %v1825_v31 = vmul.f32 %v5413_v19, %v5352_v1  ;;  %v1826_v24 = vmul.f32 %v5413_v19, %v5357_v38  ;;  %v1908_v32 = vmax.f32 %v1883_v43, %v1884_v6 }
 0x453   :  { %v1857_v55 = vadd.f32 %v5418_v14, %v1823_v60  ;;  %v1858_v49 = vadd.f32 %v5418_v14, %v1824_v57  ;;  %v1827_v26 = vmul.f32 %v5413_v19, %v5362_v41  ;;  %v1919_v27 = vpack.c.bf16 %v1906_v34, %v1905_v45 }
 0x454   :  { %v1859_v12 = vadd.f32 %v5418_v14, %v1825_v31  ;;  %v1860_v11 = vadd.f32 %v5418_v14, %v1826_v24  ;;  %v1828_v53 = vmul.f32 %v5413_v19, %v5367_v42  ;;  %v1920_v1 = vpack.c.bf16 %v1908_v32, %v1907_v17 }
 0x455   :  { %v1885_v54 = vmax.f32 %v1857_v55, 0.0  ;;  %v1886_v18 = vmax.f32 %v1858_v49, 0.0  ;;  %v1829_v38 = vmul.f32 %v5413_v19, %v5372_v10  ;;  %v1933_v30 = vrot.slane %v1919_v27, 4  ;;  %2182 = vmatprep.mubr.bf16.mxu1 %v1919_v27 }
 0x456   :  { %v1887_v15 = vmax.f32 %v1859_v12, 0.0  ;;  %v1888_v36 = vmax.f32 %v1860_v11, 0.0  ;;  %v1830_v41 = vmul.f32 %v5413_v19, %v5377_v5  ;;  %v1934_v23 = vrot.slane %v1920_v1, 4 }
 0x457   :  { %v1909_v39 = vmax.f32 %v1885_v54, %v1886_v18  ;;  %v1861_v22 = vadd.f32 %v5418_v14, %v1827_v26  ;;  %v1862_v63 = vadd.f32 %v5418_v14, %v1828_v53  ;;  %3310 = vmatmul.mubr.msk.bf16.vlgmr.msra.gmra.mrb[56].mxu1 %vm5042_vm1, %v1933_v30  ;;  %v1863_v48 = vadd.f32 %v5418_v14, %v1829_v38 }
 0x458   :  { %v1910_v42 = vmax.f32 %v1887_v15, %v1888_v36  ;;  %v1864_v10 = vadd.f32 %v5418_v14, %v1830_v41  ;;  %v1831_v3 = vmul.f32 %v5413_v19, %v5280_v0  ;;  %2190 = vmatprep.mubr.bf16.mxu1 %v1920_v1  ;;  %v1935_v5 = vsel %vm1151_vm0, %v1933_v30, %v1934_v23 }
 0x459   :  { %v1889_v7 = vmax.f32 %v1861_v22, 0.0  ;;  %v1890_v44 = vmax.f32 %v1862_v63, 0.0  ;;  %v1832_v29 = vmul.f32 %v5413_v19, %v5283_v52  ;;  %3827 = vmatmul.mubr.bf16.vlgmr.msra.gmra.mrb[84].mxu0 %v1935_v5  ;;  %v1891_v62 = vmax.f32 %v1863_v48, 0.0 }
 0x45a   :  { %v1921_v9 = vpack.c.bf16 %v1910_v42, %v1909_v39  ;;  %v1892_v50 = vmax.f32 %v1864_v10, 0.0  ;;  %v1833_v16 = vmul.f32 %v5413_v19, %v5286_v8  ;;  %3830 = vmatprep.mubr.msk.bf16.mxu0 %vm4232_vm2, %v4231_v35  ;;  %v1834_v0 = vmul.f32 %v5413_v19, %v5289_v61 }
 0x45b   :  { %v1865_v51 = vadd.f32 %v5418_v14, %v1831_v3  ;;  %v1911_v58 = vmax.f32 %v1889_v7, %v1890_v44  ;;  %v1866_v52 = vadd.f32 %v5418_v14, %v1832_v29  ;;  %v1835_v8 = vmul.f32 %v5413_v19, %v5292_v20 }
 0x45c   :  { %v1936_v13 = vrot.slane %v1921_v9, 4  ;;  %v1912_v2 = vmax.f32 %v1891_v62, %v1892_v50  ;;  %v1867_v4 = vadd.f32 %v5418_v14, %v1833_v16  ;;  %v1868_v47 = vadd.f32 %v5418_v14, %v1834_v0 }
 0x45d   :  { %v1893_v59 = vmax.f32 %v1865_v51, 0.0  ;;  %v1894_v61 = vmax.f32 %v1866_v52, 0.0  ;;  %v1836_v6 = vmul.f32 %v5413_v19, %v5295_v46  ;;  %v1837_v34 = vmul.f32 %v5413_v19, %v5298_v56 }
 0x45e   :  { %v1937_v43 = vsel %vm1151_vm0, %v1934_v23, %v1936_v13  ;;  %v1922_v45 = vpack.c.bf16 %v1912_v2, %v1911_v58  ;;  %v1895_v60 = vmax.f32 %v1867_v4, 0.0  ;;  %v1896_v57 = vmax.f32 %v1868_v47, 0.0  ;;  %v3989_v2 = vld [vmem:[#allocation10 + $0x40] sm:$0xff]  }
 0x45f   :  { %2191 = vmatmul.mubr.bf16.gmra.mrb[60].mxu1 %v1935_v5  ;;  %v1838_v17 = vmul.f32 %v5413_v19, %v5301_v28  ;;  %v1869_v31 = vadd.f32 %v5418_v14, %v1835_v8  ;;  %v1870_v24 = vadd.f32 %v5418_v14, %v1836_v6  ;;  %v1913_v32 = vmax.f32 %v1893_v59, %v1894_v61  ;;  %v3990_v4 = vld [vmem:[#allocation10] sm:$0xff]   ;;  %v3991_v61 = vld [vmem:[#allocation10 + $0x48] sm:$0xff]  }
 0x460   :  { %2198 = vmatprep.mubr.bf16.mxu1 %v1921_v9  ;;  %v1938_v20 = vrot.slane %v1922_v45, 4  ;;  %v1914_v46 = vmax.f32 %v1895_v60, %v1896_v57  ;;  %v1871_v55 = vadd.f32 %v5418_v14, %v1837_v34  ;;  %v1842_v56 = vmul.f32 %v5413_v19, %v5309_v40  ;;  %v3997_v47 = vld [vmem:[#allocation10 + $0x140] sm:$0xff]   ;;  %3610 = vmatprep.subr.bf16.mxu1 %v3989_v2  ;;  %v3992_v34 = vld [vmem:[#allocation10 + $0x8] sm:$0xff]  }
 0x461   :  { %3831 = vmatmul.mubr.bf16.gmra.mrb[88].mxu0 %v1937_v43  ;;  %v1872_v49 = vadd.f32 %v5418_v14, %v1838_v17  ;;  %v1839_v28 = vmul.f32 %v5413_v19, %v5303_v37  ;;  %v1897_v27 = vmax.f32 %v1869_v31, 0.0  ;;  %v1898_v12 = vmax.f32 %v1870_v24, 0.0  ;;  %v3998_v59 = vld [vmem:[#allocation10 + $0x100] sm:$0xff]   ;;  %3611 = vmatpush3.bf16.msra.mxu1 %v3990_v4  ;;  %v4001_v17 = vld [vmem:[#allocation10 + $0x148] sm:$0xff]  }
 0x462   :  { %3834 = vmatprep.mubr.msk.bf16.mxu0 %vm4232_vm2, %v4231_v35  ;;  %v1939_v26 = vsel %vm1151_vm0, %v1936_v13, %v1938_v20  ;;  %v1840_v11 = vmul.f32 %v5413_v19, %v5305_v25  ;;  %v1923_v53 = vpack.c.bf16 %v1914_v46, %v1913_v32  ;;  %v1899_v1 = vmax.f32 %v1871_v55, 0.0  ;;  %3654 = vmatprep.subr.bf16.mxu0 %v3997_v47  ;;  %v4002_v24 = vld [vmem:[#allocation10 + $0x108] sm:$0xff]  }
 0x463   :  { %v1900_v54 = vmax.f32 %v1872_v49, 0.0  ;;  %v1841_v18 = vmul.f32 %v5413_v19, %v5307_v33  ;;  %v1915_v37 = vmax.f32 %v1897_v27, %v1898_v12  ;;  %v1873_v40 = vadd.f32 %v5418_v14, %v1839_v28  ;;  %3655 = vmatpush3.bf16.msra.mxu0 %v3998_v59  ;;  %3612 = vmatprep.subr.bf16.mxu1 %v3991_v61  ;;  %v3993_v49 = vld [vmem:[#allocation10 + $0x50] sm:$0xff]   ;;  %v4015_v61 = vld [vmem:[#allocation10 + $0x78] sm:$0xff]  }
 0x464   :  { %v1874_v38 = vadd.f32 %v5418_v14, %v1840_v11  ;;  %v1940_v30 = vrot.slane %v1923_v53, 4  ;;  %v1876_v36 = vadd.f32 %v5418_v14, %v1842_v56  ;;  %v3994_v56 = vld [vmem:[#allocation10 + $0x10] sm:$0xff]   ;;  %3656 = vmatprep.subr.bf16.mxu0 %v4001_v17 }
 0x465   :  { %v1916_v15 = vmax.f32 %v1899_v1, %v1900_v54  ;;  %v1875_v25 = vadd.f32 %v5418_v14, %v1841_v18  ;;  %v1901_v41 = vmax.f32 %v1873_v40, 0.0  ;;  %3613 = vmatpush3.bf16.msra.mxu1 %v3992_v34  ;;  %v4003_v11 = vld [vmem:[#allocation10 + $0x150] sm:$0xff]   ;;  %v4007_v1 = vld [vmem:[#allocation10 + $0x158] sm:$0xff]  }
 0x466   :  { %v1902_v23 = vmax.f32 %v1874_v38, 0.0  ;;  %v1941_v33 = vsel %vm1151_vm0, %v1938_v20, %v1940_v30  ;;  %v1904_v22 = vmax.f32 %v1876_v36, 0.0  ;;  %3614 = vmatprep.subr.bf16.mxu1 %v3993_v49  ;;  %v3999_v38 = vld [vmem:[#allocation10 + $0x60] sm:$0xff]   ;;  %v4019_v34 = vld [vmem:[#allocation10 + $0x178] sm:$0xff]  }
 0x467   :  { %2199 = vmatmul.mubr.bf16.gmra.mrb[64].mxu1 %v1937_v43  ;;  %v1924_v19 = vpack.c.bf16 %v1916_v15, %v1915_v37  ;;  %v1903_v39 = vmax.f32 %v1875_v25, 0.0  ;;  %3657 = vmatpush3.bf16.msra.mxu0 %v4002_v24  ;;  %v3996_v37 = vld [vmem:[#allocation10 + $0x18] sm:$0xff]  }
 0x468   :  { %2206 = vmatprep.mubr.bf16.mxu1 %v1922_v45  ;;  %v1917_v42 = vmax.f32 %v1901_v41, %v1902_v23  ;;  %3658 = vmatprep.subr.bf16.mxu0 %v4003_v11  ;;  %v4009_v41 = vld [vmem:[#allocation10 + $0x160] sm:$0xff]  }
 0x469   :  { %3835 = vmatmul.mubr.bf16.gmra.mrb[92].mxu0 %v1939_v26  ;;  %v1942_v63 = vrot.slane %v1924_v19, 4  ;;  %v1918_v48 = vmax.f32 %v1903_v39, %v1904_v22  ;;  %3615 = vmatpush3.bf16.msra.mxu1 %v3994_v56 }
 0x46a   :  { %3838 = vmatprep.mubr.msk.bf16.mxu0 %vm4232_vm2, %v4231_v35 }
 0x46b   :  { %v1943_v14 = vsel %vm1151_vm0, %v1940_v30, %v1942_v63  ;;  %v1925_v10 = vpack.c.bf16 %v1918_v48, %v1917_v42  ;;  %v4008_v30 = vld [vmem:[#allocation10 + $0x118] sm:$0xff]   ;;  %v4005_v48 = vld [vmem:[#allocation10 + $0x68] sm:$0xff]  }
 0x46d   :  { %v1944_v3 = vrot.slane %v1925_v10, 4 }
 0x46f   :  { %2207 = vmatmul.mubr.bf16.gmra.mrb[68].mxu1 %v1939_v26  ;;  %v1945_v5 = vsel %vm1151_vm0, %v1942_v63, %v1944_v3  ;;  %v3995_v26 = vld [vmem:[#allocation10 + $0x58] sm:$0xff]   ;;  %v4000_v63 = vld [vmem:[#allocation10 + $0x20] sm:$0xff]  }
 0x470   :  { %2214 = vmatprep.mubr.bf16.mxu1 %v1923_v53  ;;  %v4004_v53 = vld [vmem:[#allocation10 + $0x110] sm:$0xff]   ;;  %3616 = vmatprep.subr.bf16.mxu1 %v3995_v26 }
 0x471   :  { %3839 = vmatmul.mubr.bf16.gmra.mrb[96].mxu0 %v1941_v33  ;;  %3617 = vmatpush3.bf16.msra.mxu1 %v3996_v37 }
 0x472   :  { %3842 = vmatprep.mubr.msk.bf16.mxu0 %vm4232_vm2, %v4231_v35  ;;  %3659 = vmatpush3.bf16.msra.mxu0 %v4004_v53 }
 0x473   :  { %3660 = vmatprep.subr.bf16.mxu0 %v4007_v1  ;;  %3618 = vmatprep.subr.bf16.mxu1 %v3999_v38 }
 0x475   :  { %3619 = vmatpush3.bf16.msra.mxu1 %v4000_v63 }
 0x476   :  { %3661 = vmatpush3.bf16.msra.mxu0 %v4008_v30  ;;  %3620 = vmatprep.subr.bf16.mxu1 %v4005_v48 }
 0x477   :  { %2215 = vmatmul.mubr.bf16.gmra.mrb[72].mxu1 %v1941_v33  ;;  %3662 = vmatprep.subr.bf16.mxu0 %v4009_v41 }
 0x478   :  { %2222 = vmatprep.mubr.bf16.mxu1 %v1924_v19 }
 0x479   :  { %3843 = vmatmul.mubr.bf16.gmra.mrb[100].mxu0 %v1943_v14 }
 0x47a   :  { %3846 = vmatprep.mubr.msk.bf16.mxu0 %vm4232_vm2, %v4231_v35 }
 0x47f   :  { %2223 = vmatmul.mubr.bf16.gmra.mrb[76].mxu1 %v1943_v14  ;;  %v4011_v14 = vld [vmem:[#allocation10 + $0x120] sm:$0xff]  }
 0x480   :  { %2230 = vmatprep.mubr.bf16.mxu1 %v1925_v10  ;;  %3663 = vmatpush3.bf16.msra.mxu0 %v4011_v14 }
 0x481   :  { %3847 = vmatmul.mubr.bf16.gmra.mrb[104].mxu0 %v1945_v5 }
 0x482   :  { %3850 = vmatprep.mubr.msk.bf16.mxu0 %vm4232_vm2, %v4231_v35 }
 0x487   :  { %2231 = vmatmul.mubr.bf16.gmra.mrb[80].mxu1 %v1945_v5  ;;  %v4013_v5 = vld [vmem:[#allocation10 + $0x168] sm:$0xff]  }
 0x488   :  { %3664 = vmatprep.subr.bf16.mxu0 %v4013_v5 }
 0x489   :  { %3851 = vmatmul.mubr.msk.bf16.gmra.mrb[108].mxu0 %vm1151_vm0, %v1944_v3 }
 0x52a   :  { %v3553_v7 = vpop.f32.mrb[56].mxu1 }
 0x52b   :  { %v3554_v44 = vpop.f32.mrb[57].mxu1 }
 0x52c   :  { %v3555_v29 = vadd.f32 %v3554_v44, %v3553_v7  ;;  %v2273_v9 = vpop.f32.mrb[84].mxu0  ;;  %v3556_v62 = vpop.f32.mrb[58].mxu1 }
 0x52d   :  { %v3828_v50 = vpop.f32.mrb[85].mxu0  ;;  %v3557_v16 = vpop.f32.mrb[59].mxu1 }
 0x52e   :  { %v5525_v0 = vadd.f32 %v3555_v29, %v2273_v9  ;;  %v3558_v51 = vadd.f32 %v3557_v16, %v3556_v62  ;;  %v2276_v13 = vpop.f32.mrb[86].mxu0  ;;  %v4006_v29 = vld [vmem:[#allocation10 + $0x28] sm:$0xff]   ;;  %v4010_v62 = vld [vmem:[#allocation10 + $0x70] sm:$0xff]  }
 0x52f   :  { %v3829_v58 = vpop.f32.mrb[87].mxu0  ;;  %v4014_v50 = vld [vmem:[#allocation10 + $0x128] sm:$0xff]   ;;  %3621 = vmatpush3.bf16.msra.mxu1 %v4006_v29 }
 0x530   :  { %v5527_v52 = vadd.f32 %v3558_v51, %v2276_v13  ;;  %v4016_v58 = vld [vmem:[#allocation10 + $0x170] sm:$0xff]   ;;  %3622 = vmatprep.subr.bf16.mxu1 %v4010_v62  ;;  %3665 = vmatpush3.bf16.msra.mxu0 %v4014_v50 }
 0x531   :  { %3666 = vmatprep.subr.bf16.mxu0 %v4016_v58 }
 0x532   :  { %v2330_v8 = vadd.f32 %v5527_v52, %v5525_v0  ;;  %v3559_v43 = vpop.f32.mrb[60].mxu1 }
 0x533   :  { %v3560_v45 = vpop.f32.mrb[61].mxu1 }
 0x534   :  { %v3561_v6 = vadd.f32 %v3560_v45, %v3559_v43  ;;  %v2281_v60 = vpop.f32.mrb[88].mxu0  ;;  %v3562_v57 = vpop.f32.mrb[62].mxu1  ;;  %v4012_v43 = vld [vmem:[#allocation10 + $0x30] sm:$0xff]  }
 0x535   :  { %v3832_v20 = vpop.f32.mrb[89].mxu0  ;;  %v3563_v31 = vpop.f32.mrb[63].mxu1  ;;  %3623 = vmatpush3.bf16.msra.mxu1 %v4012_v43 }
 0x536   :  { %v5531_v32 = vadd.f32 %v3561_v6, %v2281_v60  ;;  %v3564_v46 = vadd.f32 %v3563_v31, %v3562_v57  ;;  %v2284_v55 = vpop.f32.mrb[90].mxu0  ;;  %v4018_v6 = vld [vmem:[#allocation10 + $0x130] sm:$0xff]   ;;  %v4017_v31 = vld [vmem:[#allocation10 + $0x38] sm:$0xff]   ;;  %3624 = vmatprep.subr.bf16.mxu1 %v4015_v61 }
 0x537   :  { %v3833_v28 = vpop.f32.mrb[91].mxu0  ;;  %3667 = vmatpush3.bf16.msra.mxu0 %v4018_v6 }
 0x538   :  { %v2331_v27 = vadd.f32 %v2330_v8, %v5531_v32  ;;  %v5534_v12 = vadd.f32 %v3564_v46, %v2284_v55  ;;  %v4020_v46 = vld [vmem:[#allocation10 + $0x138] sm:$0xff]   ;;  %v4021_v55 = vld [vmem:[#allocation10 + $0xc0] sm:$0xff]   ;;  %3668 = vmatprep.subr.bf16.mxu0 %v4019_v34 }
 0x539   :  { %3625 = vmatpush3.bf16.msra.mxu1 %v4017_v31 }
 0x53a   :  { %v2332_v54 = vadd.f32 %v2331_v27, %v5534_v12  ;;  %v3565_v18 = vpop.f32.mrb[64].mxu1  ;;  %3632 = vmatprep.subr.bf16.mxu1 %v4021_v55 }
 0x53b   :  { %v3566_v40 = vpop.f32.mrb[65].mxu1  ;;  %3669 = vmatpush3.bf16.msra.mxu0 %v4020_v46 }
 0x53c   :  { %v3567_v15 = vadd.f32 %v3566_v40, %v3565_v18  ;;  %v2289_v25 = vpop.f32.mrb[92].mxu0  ;;  %v3568_v36 = vpop.f32.mrb[66].mxu1  ;;  %3874 = vmatprep.subr.bf16.mxu0 %v4231_v35 }
 0x53d   :  { %v3836_v23 = vpop.f32.mrb[93].mxu0  ;;  %v3569_v33 = vpop.f32.mrb[67].mxu1 }
 0x53e   :  { %v5537_v19 = vadd.f32 %v3567_v15, %v2289_v25  ;;  %v3570_v39 = vadd.f32 %v3569_v33, %v3568_v36  ;;  %v2292_v22 = vpop.f32.mrb[94].mxu0 }
 0x53f   :  { %v3837_v42 = vpop.f32.mrb[95].mxu0 }
 0x540   :  { %v2333_v10 = vadd.f32 %v2332_v54, %v5537_v19  ;;  %v5540_v3 = vadd.f32 %v3570_v39, %v2292_v22 }
 0x542   :  { %v2334_v7 = vadd.f32 %v2333_v10, %v5540_v3  ;;  %v3571_v44 = vpop.f32.mrb[68].mxu1 }
 0x543   :  { %v3572_v9 = vpop.f32.mrb[69].mxu1 }
 0x544   :  { %v3573_v16 = vadd.f32 %v3572_v9, %v3571_v44  ;;  %v2297_v51 = vpop.f32.mrb[96].mxu0  ;;  %v3574_v13 = vpop.f32.mrb[70].mxu1 }
 0x545   :  { %v3840_v2 = vpop.f32.mrb[97].mxu0  ;;  %v3575_v4 = vpop.f32.mrb[71].mxu1 }
 0x546   :  { %v5543_v47 = vadd.f32 %v3573_v16, %v2297_v51  ;;  %v3576_v59 = vadd.f32 %v3575_v4, %v3574_v13  ;;  %v2300_v8 = vpop.f32.mrb[98].mxu0 }
 0x547   :  { %v3841_v45 = vpop.f32.mrb[99].mxu0 }
 0x548   :  { %v2335_v60 = vadd.f32 %v2334_v7, %v5543_v47  ;;  %v5546_v57 = vadd.f32 %v3576_v59, %v2300_v8 }
 0x54a   :  { %v2336_v17 = vadd.f32 %v2335_v60, %v5546_v57  ;;  %v3577_v20 = vpop.f32.mrb[72].mxu1 }
 0x54b   :  { %v3578_v24 = vpop.f32.mrb[73].mxu1 }
 0x54c   :  { %v3579_v49 = vadd.f32 %v3578_v24, %v3577_v20  ;;  %v2305_v56 = vpop.f32.mrb[100].mxu0  ;;  %v3580_v28 = vpop.f32.mrb[74].mxu1 }
 0x54d   :  { %v3844_v26 = vpop.f32.mrb[101].mxu0  ;;  %v3581_v27 = vpop.f32.mrb[75].mxu1 }
 0x54e   :  { %v2306_v11 = vadd.f32 %v3579_v49, %v2305_v56  ;;  %v3582_v53 = vadd.f32 %v3581_v27, %v3580_v28  ;;  %v2308_v1 = vpop.f32.mrb[102].mxu0 }
 0x54f   :  { %v3845_v54 = vpop.f32.mrb[103].mxu0 }
 0x550   :  { %v2337_v18 = vadd.f32 %v2336_v17, %v2306_v11  ;;  %v2309_v37 = vadd.f32 %v3582_v53, %v2308_v1 }
 0x552   :  { %v2338_v40 = vadd.f32 %v2337_v18, %v2309_v37  ;;  %v3583_v38 = vpop.f32.mrb[76].mxu1 }
 0x553   :  { %v3584_v30 = vpop.f32.mrb[77].mxu1 }
 0x554   :  { %v3585_v15 = vadd.f32 %v3584_v30, %v3583_v38  ;;  %v2313_v25 = vpop.f32.mrb[104].mxu0  ;;  %v3586_v36 = vpop.f32.mrb[78].mxu1 }
 0x555   :  { %v3848_v41 = vpop.f32.mrb[105].mxu0  ;;  %v3587_v23 = vpop.f32.mrb[79].mxu1 }
 0x556   :  { %v2314_v33 = vadd.f32 %v3585_v15, %v2313_v25  ;;  %v3588_v39 = vadd.f32 %v3587_v23, %v3586_v36  ;;  %v2316_v22 = vpop.f32.mrb[106].mxu0 }
 0x557   :  { %v3849_v63 = vpop.f32.mrb[107].mxu0 }
 0x558   :  { %v2339_v42 = vadd.f32 %v2338_v40, %v2314_v33  ;;  %v2317_v48 = vadd.f32 %v3588_v39, %v2316_v22 }
 0x55a   :  { %v2340_v14 = vadd.f32 %v2339_v42, %v2317_v48  ;;  %v3589_v10 = vpop.f32.mrb[80].mxu1 }
 0x55b   :  { %v3590_v5 = vpop.f32.mrb[81].mxu1 }
 0x55c   :  { %v3591_v7 = vadd.f32 %v3590_v5, %v3589_v10  ;;  %v2321_v44 = vpop.f32.mrb[108].mxu0  ;;  %v3592_v29 = vpop.f32.mrb[82].mxu1 }
 0x55d   :  { %v3852_v9 = vpop.f32.mrb[109].mxu0  ;;  %v3593_v62 = vpop.f32.mrb[83].mxu1 }
 0x55e   :  { %v2322_v50 = vadd.f32 %v3591_v7, %v2321_v44  ;;  %v3594_v16 = vadd.f32 %v3593_v62, %v3592_v29  ;;  %v2324_v51 = vpop.f32.mrb[110].mxu0 }
 0x55f   :  { %v3853_v13 = vpop.f32.mrb[111].mxu0 }
 0x560   :  { %v2341_v58 = vadd.f32 %v2340_v14, %v2322_v50  ;;  %v2325_v2 = vadd.f32 %v3594_v16, %v2324_v51  ;;  %v2328_v16 = vld [vmem:[%s5635_s8] sm:$0x1] }
 0x562   :  { %v2342_v4 = vadd.f32 %v2341_v58, %v2325_v2 }
 0x564   :  { %v2343_v59 = vrot.slane %v2342_v4, 4 }
 0x566   :  { %v2344_v8 = vadd.f32 %v2343_v59, %v2342_v4 }
 0x568   :  { %v2345_v43 = vrot.slane %v2344_v8, 2 }
 0x56a   :  { %v2346_v45 = vadd.f32 %v2345_v43, %v2344_v8 }
 0x56c   :  { %v2347_v61 = vrot.slane %v2346_v45, 1 }
 0x56e   :  { %v2348_v6 = vadd.f32 %v2347_v61, %v2346_v45 }
 0x570   :  { %v2349_v60 = vmul.f32 0.008928572, %v2348_v6 }
 0x572   :  { %v2350_v34 = vsub.f32 %v5525_v0, %v2349_v60  ;;  %v2351_v17 = vsub.f32 %v5527_v52, %v2349_v60  ;;  %v2352_v20 = vsub.f32 %v5531_v32, %v2349_v60  ;;  %v2353_v31 = vsub.f32 %v5534_v12, %v2349_v60 }
 0x573   :  { %v5555_v24 = vsub.f32 %v5537_v19, %v2349_v60  ;;  %v5558_v46 = vsub.f32 %v5540_v3, %v2349_v60  ;;  %v5561_v55 = vsub.f32 %v5543_v47, %v2349_v60  ;;  %v5564_v49 = vsub.f32 %v5546_v57, %v2349_v60 }
 0x574   :  { %v2358_v56 = vsub.f32 %v2306_v11, %v2349_v60  ;;  %v2359_v0 = vsub.f32 %v2309_v37, %v2349_v60  ;;  %v2360_v28 = vsub.f32 %v2314_v33, %v2349_v60  ;;  %v2361_v52 = vsub.f32 %v2317_v48, %v2349_v60 }
 0x575   :  { %v5566_v26 = vsub.f32 %v2322_v50, %v2349_v60  ;;  %v2363_v32 = vsub.f32 %v2325_v2, %v2349_v60  ;;  %v2364_v12 = vmul.f32 %v2350_v34, %v2350_v34  ;;  %v2365_v27 = vmul.f32 %v2351_v17, %v2351_v17  ;;  %v3312_v2 = vld [vmem:[%s5636_s9] ss:$0 sm:$0xff] }
 0x576   :  { %v2366_v19 = vmul.f32 %v2352_v20, %v2352_v20  ;;  %v2367_v1 = vmul.f32 %v2353_v31, %v2353_v31  ;;  %v2368_v47 = vmul.f32 %v5555_v24, %v5555_v24  ;;  %v2369_v57 = vmul.f32 %v5558_v46, %v5558_v46 }
 0x577   :  { %v2378_v53 = vadd.f32 %v2365_v27, %v2364_v12  ;;  %v2370_v18 = vmul.f32 %v5561_v55, %v5561_v55  ;;  %v2371_v40 = vmul.f32 %v5564_v49, %v5564_v49  ;;  %v2372_v30 = vmul.f32 %v2358_v56, %v2358_v56 }
 0x578   :  { %v2373_v25 = vmul.f32 %v2359_v0, %v2359_v0  ;;  %v2374_v41 = vmul.f32 %v2360_v28, %v2360_v28  ;;  %v2375_v33 = vmul.f32 %v2361_v52, %v2361_v52  ;;  %v2376_v22 = vmul.f32 %v5566_v26, %v5566_v26 }
 0x579   :  { %v2379_v3 = vadd.f32 %v2378_v53, %v2366_v19  ;;  %v2377_v42 = vmul.f32 %v2363_v32, %v2363_v32 }
 0x57b   :  { %v2380_v54 = vadd.f32 %v2379_v3, %v2367_v1 }
 0x57d   :  { %v2381_v11 = vadd.f32 %v2380_v54, %v2368_v47 }
 0x57f   :  { %v2382_v37 = vadd.f32 %v2381_v11, %v2369_v57 }
 0x581   :  { %v2383_v38 = vadd.f32 %v2382_v37, %v2370_v18 }
 0x583   :  { %v2384_v15 = vadd.f32 %v2383_v38, %v2371_v40 }
 0x585   :  { %v2385_v36 = vadd.f32 %v2384_v15, %v2372_v30 }
 0x587   :  { %v2386_v23 = vadd.f32 %v2385_v36, %v2373_v25 }
 0x589   :  { %v2387_v39 = vadd.f32 %v2386_v23, %v2374_v41 }
 0x58b   :  { %v2388_v63 = vadd.f32 %v2387_v39, %v2375_v33 }
 0x58d   :  { %v2389_v48 = vadd.f32 %v2388_v63, %v2376_v22 }
 0x58f   :  { %v2390_v14 = vadd.f32 %v2389_v48, %v2377_v42  ;;  %v4022_v48 = vld [vmem:[#allocation10 + $0x80] sm:$0xff]  }
 0x591   :  { %v2391_v10 = vrot.slane %v2390_v14, 4 }
 0x593   :  { %v2392_v5 = vadd.f32 %v2391_v10, %v2390_v14 }
 0x595   :  { %v2393_v7 = vrot.slane %v2392_v5, 2 }
 0x597   :  { %v2394_v44 = vadd.f32 %v2393_v7, %v2392_v5  ;;  %v4023_v7 = vld [vmem:[#allocation10 + $0xc8] sm:$0xff]  }
 0x599   :  { %v2395_v29 = vrot.slane %v2394_v44, 1 }
 0x59b   :  { %v2396_v9 = vadd.f32 %v2395_v29, %v2394_v44 }
 0x59d   :  { %v2397_v62 = vmul.f32 0.008928572, %v2396_v9 }
 0x59f   :  { %v2398_v50 = vadd.f32 1e-05, %v2397_v62 }
 0x5a1   :  { %4057 = vrsqrt.f32 %v2398_v50  ;;  %v4025_v50 = vld [vmem:[#allocation10 + $0xd0] sm:$0xff]  }
 0x5ab   :  { %v4058_v51 = vpop.eup %4057 }
 0x5ac   :  { %v2400_v13 = vmul.f32 %v4058_v51, %v2328_v16  ;;  %v4026_v51 = vld [vmem:[#allocation10 + $0x90] sm:$0xff]  }
 0x5ae   :  { %v2404_v58 = vrot.slane %v2400_v13, %v5713_v21  ;;  %v4027_v13 = vld [vmem:[#allocation10 + $0xd8] sm:$0xff]  }
 0x5b0   :  { %v2418_v4 = vmul.f32 %v2404_v58, %v2363_v32  ;;  %v2405_v59 = vmul.f32 %v2404_v58, %v2350_v34  ;;  %v2406_v8 = vmul.f32 %v2404_v58, %v2351_v17  ;;  %v2407_v43 = vmul.f32 %v2404_v58, %v2352_v20 }
 0x5b1   :  { %v2408_v45 = vmul.f32 %v2404_v58, %v2353_v31  ;;  %v2413_v61 = vmul.f32 %v2404_v58, %v2358_v56  ;;  %v2414_v6 = vmul.f32 %v2404_v58, %v2359_v0  ;;  %v2415_v60 = vmul.f32 %v2404_v58, %v2360_v28 }
 0x5b2   :  { %v2438_v12 = vadd.f32 %v3312_v2, %v2418_v4  ;;  %v2425_v27 = vadd.f32 %v3312_v2, %v2405_v59  ;;  %v2426_v19 = vadd.f32 %v3312_v2, %v2406_v8  ;;  %v2427_v53 = vadd.f32 %v3312_v2, %v2407_v43  ;;  %v4030_v4 = vld [vmem:[#allocation10 + $0xa0] sm:$0xff]   ;;  %v4031_v59 = vld [vmem:[#allocation10 + $0xe8] sm:$0xff]   ;;  %v4033_v43 = vld [vmem:[#allocation10 + $0xf0] sm:$0xff]  }
 0x5b3   :  { %v2428_v1 = vadd.f32 %v3312_v2, %v2408_v45  ;;  %v2416_v3 = vmul.f32 %v2404_v58, %v2361_v52  ;;  %v2433_v47 = vadd.f32 %v3312_v2, %v2413_v61  ;;  %v2434_v21 = vadd.f32 %v3312_v2, %v2414_v6  ;;  %v4032_v8 = vld [vmem:[#allocation10 + $0xa8] sm:$0xff]   ;;  %v4034_v45 = vld [vmem:[#allocation10 + $0xb0] sm:$0xff]   ;;  %v4035_v61 = vld [vmem:[#allocation10 + $0xf8] sm:$0xff]  }
 0x5b4   :  { %v2439_v54 = vmax.f32 %v2425_v27, 0.0  ;;  %v2440_v57 = vmax.f32 %v2426_v19, 0.0  ;;  %v2441_v11 = vmax.f32 %v2427_v53, 0.0  ;;  %v2435_v32 = vadd.f32 %v3312_v2, %v2415_v60  ;;  %v4036_v6 = vld [vmem:[#allocation10 + $0xb8] sm:$0xff]   ;;  %v4037_v60 = vld [vmem:[#allocation10 + $0x180] sm:$0xff]   ;;  %v4039_v27 = vld [vmem:[#allocation10 + $0x190] sm:$0xff]  }
 0x5b5   :  { %v2442_v18 = vmax.f32 %v2428_v1, 0.0  ;;  %v2436_v34 = vadd.f32 %v3312_v2, %v2416_v3  ;;  %v2447_v17 = vmax.f32 %v2433_v47, 0.0  ;;  %v2448_v31 = vmax.f32 %v2434_v21, 0.0  ;;  %v4040_v19 = vld [vmem:[#allocation10 + $0x198] sm:$0xff]   ;;  %v4041_v53 = vld [vmem:[#allocation10 + $0x1a0] sm:$0xff]   ;;  %v4042_v1 = vld [vmem:[#allocation10 + $0x1a8] sm:$0xff]  }
 0x5b6   :  { %v2453_v20 = vmax.f32 %v2439_v54, %v2440_v57  ;;  %v2409_v56 = vmul.f32 %v2404_v58, %v5555_v24  ;;  %v2410_v0 = vmul.f32 %v2404_v58, %v5558_v46  ;;  %v2449_v37 = vmax.f32 %v2435_v32, 0.0  ;;  %v4043_v3 = vld [vmem:[#allocation10 + $0x1b0] sm:$0xff]   ;;  %v4044_v47 = vld [vmem:[#allocation10 + $0x1b8] sm:$0xff]   ;;  %v4045_v54 = vld [vmem:[#allocation11] sm:$0xff]  }
 0x5b7   :  { %v2454_v28 = vmax.f32 %v2441_v11, %v2442_v18  ;;  %v2450_v40 = vmax.f32 %v2436_v34, 0.0  ;;  %v2411_v52 = vmul.f32 %v2404_v58, %v5561_v55  ;;  %v2457_v38 = vmax.f32 %v2447_v17, %v2448_v31  ;;  %v4046_v57 = vld [vmem:[#allocation11 + $0x8] sm:$0xff]   ;;  %v4047_v11 = vld [vmem:[#allocation11 + $0x10] sm:$0xff]   ;;  %v4048_v18 = vld [vmem:[#allocation11 + $0x18] sm:$0xff]  }
 0x5b8   :  { %v2412_v30 = vmul.f32 %v2404_v58, %v5564_v49  ;;  %v2429_v15 = vadd.f32 %v3312_v2, %v2409_v56  ;;  %v2430_v25 = vadd.f32 %v3312_v2, %v2410_v0  ;;  %v2417_v33 = vmul.f32 %v2404_v58, %v5566_v26  ;;  %v4024_v26 = vld [vmem:[#allocation10 + $0x88] sm:$0xff]   ;;  %v4028_v58 = vld [vmem:[#allocation10 + $0x98] sm:$0xff]   ;;  %v4049_v32 = vld [vmem:[#allocation11 + $0x20] sm:$0xff]  }
 0x5b9   :  { %v2460_v36 = vpack.c.bf16 %v2454_v28, %v2453_v20  ;;  %v2458_v41 = vmax.f32 %v2449_v37, %v2450_v40  ;;  %v2431_v23 = vadd.f32 %v3312_v2, %v2411_v52  ;;  %v2452_v39 = vmax.f32 %v2438_v12, 0.0  ;;  %v4038_v12 = vld [vmem:[#allocation10 + $0x188] sm:$0xff]   ;;  %v4051_v17 = vld [vmem:[#allocation11 + $0x30] sm:$0xff]   ;;  %v4052_v20 = vld [vmem:[#allocation11 + $0x38] sm:$0xff]  }
 0x5ba   :  { %v2432_v22 = vadd.f32 %v3312_v2, %v2412_v30  ;;  %v2443_v24 = vmax.f32 %v2429_v15, 0.0  ;;  %v2444_v63 = vmax.f32 %v2430_v25, 0.0  ;;  %v2437_v10 = vadd.f32 %v3312_v2, %v2417_v33  ;;  %v4029_v2 = vld [vmem:[#allocation10 + $0xe0] sm:$0xff]   ;;  %v4050_v34 = vld [vmem:[#allocation11 + $0x28] sm:$0xff]  }
 0x5bb   :  { %v2465_v46 = vrot.slane %v2460_v36, 4  ;;  %v2462_v42 = vpack.c.bf16 %v2458_v41, %v2457_v38  ;;  %v2445_v14 = vmax.f32 %v2431_v23, 0.0  ;;  %v3313_v25 = vld [vmem:[%s5638_s11] ss:$0 sm:$0xff]  ;;  %s4233_s11 = smov [#allocation13]  }
 0x5bc   :  { %v2446_v55 = vmax.f32 %v2432_v22, 0.0  ;;  %v2455_v5 = vmax.f32 %v2443_v24, %v2444_v63  ;;  %v2451_v44 = vmax.f32 %v2437_v10, 0.0  ;;  %s3208_s28 = sshll.u32 %s4233_s11, 4  ;;  %s3209_s28 = int_to_ptr.vmem [resolvable:$true] %s3208_s28 }
 0x5bd   :  { %2960 = vmatprep.mubr.bf16.mxu1 %v2465_v46  ;;  %v2471_v49 = vrot.slane %v2462_v42, 4  ;;  %s4191_s15 = scalar_lea.vmem %s3209_s28, 128  ;;  %p4196_p7 = scmp.lt.s32.totalorder %s3209_s28, %s3209_s28 }
 0x5be   :  { %2961 = vmatmul.mubr.bf16.vlgmr.msra.gmra.mrb[84].mxu1 %v2460_v36  ;;  %v2456_v29 = vmax.f32 %v2445_v14, %v2446_v55  ;;  %v2459_v9 = vmax.f32 %v2451_v44, %v2452_v39  ;;  %p4192_p6 = scmp.ne.s32.totalorder %s3209_s28, %s4191_s15  ;;  %p4197_p8 = scmp.lt.s32.totalorder %s4191_s15, %s4191_s15 }
 0x5bf   :  { %3040 = vmatprep.mubr.bf16.mxu0 %v2471_v49  ;;  %3633 = vmatpush3.bf16.msra.mxu1 %v4022_v48 }
 0x5c0   :  { %3041 = vmatmul.mubr.bf16.vlgmr.msra.gmra.mrb[112].mxu0 %v2462_v42  ;;  %v2461_v62 = vpack.c.bf16 %v2456_v29, %v2455_v5  ;;  %3634 = vmatprep.subr.bf16.mxu1 %v4023_v7  ;;  %v2463_v21 = vpack.c.bf16 %v2459_v9, %v2459_v9  ;;  %v3370_v5 = vld [vmem:[%s5640_s13] ss:$0 sm:$0xff]  ;;  %p4198_p9 = por %p4197_p8, %p4196_p7 }
 0x5c1   :  { %3890 = vmatprep.mubr.msk.bf16.mxu0 %vm4232_vm2, %v4231_v35  ;;  %3875 = vmatpush3.bf16.msra.mxu0 %v4045_v54 }
 0x5c2   :  { %v2468_v16 = vrot.slane %v2461_v62, 4  ;;  %3876 = vmatprep.subr.bf16.mxu0 %v4231_v35  ;;  %p4199_p10 = pnand %p4198_p9, %p4192_p6 }
 0x5c3   :  { %3635 = vmatpush3.bf16.msra.mxu1 %v4024_v26 }
 0x5c4   :  { %3000 = vmatprep.mubr.bf16.mxu1 %v2468_v16  ;;  %3636 = vmatprep.subr.bf16.mxu1 %v4025_v50 }
 0x5c5   :  { %3877 = vmatpush3.bf16.msra.mxu0 %v4046_v57 }
 0x5c6   :  { %3878 = vmatprep.subr.bf16.mxu0 %v4231_v35 }
 0x5c7   :  { %3637 = vmatpush3.bf16.msra.mxu1 %v4026_v51 }
 0x5c8   :  { %3638 = vmatprep.subr.bf16.mxu1 %v4027_v13 }
 0x5c9   :  { %3879 = vmatpush3.bf16.msra.mxu0 %v4047_v11 }
 0x5ca   :  { %3880 = vmatprep.subr.bf16.mxu0 %v4231_v35 }
 0x5cb   :  { %3639 = vmatpush3.bf16.msra.mxu1 %v4028_v58 }
 0x5cc   :  { %3640 = vmatprep.subr.bf16.mxu1 %v4029_v2 }
 0x5cd   :  { %3881 = vmatpush3.bf16.msra.mxu0 %v4048_v18 }
 0x5ce   :  { %3882 = vmatprep.subr.bf16.mxu0 %v4231_v35 }
 0x5cf   :  { %3641 = vmatpush3.bf16.msra.mxu1 %v4030_v4 }
 0x5d0   :  { %3642 = vmatprep.subr.bf16.mxu1 %v4031_v59 }
 0x5d1   :  { %3883 = vmatpush3.bf16.msra.mxu0 %v4049_v32 }
 0x5d2   :  { %3884 = vmatprep.subr.bf16.mxu0 %v4231_v35 }
 0x5d3   :  { %3643 = vmatpush3.bf16.msra.mxu1 %v4032_v8 }
 0x5d4   :  { %3644 = vmatprep.subr.bf16.mxu1 %v4033_v43 }
 0x5d5   :  { %3885 = vmatpush3.bf16.msra.mxu0 %v4050_v34 }
 0x5d6   :  { %3886 = vmatprep.subr.bf16.mxu0 %v4231_v35 }
 0x5d7   :  { %3645 = vmatpush3.bf16.msra.mxu1 %v4034_v45 }
 0x5d8   :  { %3646 = vmatprep.subr.bf16.mxu1 %v4035_v61 }
 0x5d9   :  { %3887 = vmatpush3.bf16.msra.mxu0 %v4051_v17 }
 0x5da   :  { %3888 = vmatprep.subr.bf16.mxu0 %v4231_v35 }
 0x5db   :  { %3647 = vmatpush3.bf16.msra.mxu1 %v4036_v6 }
 0x5dc   :  { %3854 = vmatprep.subr.bf16.mxu1 %v4231_v35 }
 0x5dd   :  { %3889 = vmatpush3.bf16.msra.mxu0 %v4052_v20 }
 0x5de   :  { %3001 = vmatmul.mubr.bf16.vlgmr.msra.gmra.mrb[88].mxu1 %v2461_v62 }
 0x5df   :  { %3855 = vmatpush3.bf16.msra.mxu1 %v4037_v60  ;;  %3870 = vmatprep.mubr.msk.bf16.mxu1 %vm4232_vm2, %v4231_v35 }
 0x5e0   :  { %3856 = vmatprep.subr.bf16.mxu1 %v4231_v35 }
 0x5e3   :  { %3857 = vmatpush3.bf16.msra.mxu1 %v4038_v12 }
 0x5e4   :  { %3858 = vmatprep.subr.bf16.mxu1 %v4231_v35 }
 0x5e7   :  { %3859 = vmatpush3.bf16.msra.mxu1 %v4039_v27 }
 0x5e8   :  { %3860 = vmatprep.subr.bf16.mxu1 %v4231_v35 }
 0x5eb   :  { %3861 = vmatpush3.bf16.msra.mxu1 %v4040_v19 }
 0x5ec   :  { %3862 = vmatprep.subr.bf16.mxu1 %v4231_v35 }
 0x5ef   :  { %3863 = vmatpush3.bf16.msra.mxu1 %v4041_v53 }
 0x5f0   :  { %3864 = vmatprep.subr.bf16.mxu1 %v4231_v35 }
 0x5f3   :  { %3865 = vmatpush3.bf16.msra.mxu1 %v4042_v1 }
 0x5f4   :  { %3866 = vmatprep.subr.bf16.mxu1 %v4231_v35 }
 0x5f7   :  { %3867 = vmatpush3.bf16.msra.mxu1 %v4043_v3 }
 0x5f8   :  { %3868 = vmatprep.subr.bf16.mxu1 %v4231_v35 }
 0x5fb   :  { %3869 = vmatpush3.bf16.msra.mxu1 %v4044_v47 }
 0x5fe   :  { %3871 = vmatmul.mubr.bf16.vlgmr.msra.gmra.mrb[92].mxu1 %v2463_v21 }
 0x691   :  { %v3626_v31 = vpop.f32.mrb[84].mxu1 }
 0x692   :  { %v3627_v56 = vpop.f32.mrb[85].mxu1 }
 0x693   :  { %v3670_v0 = vpop.f32.mrb[112].mxu0  ;;  %v3628_v28 = vadd.f32 %v3627_v56, %v3626_v31  ;;  %v3629_v37 = vpop.f32.mrb[86].mxu1 }
 0x694   :  { %v3671_v40 = vpop.f32.mrb[113].mxu0  ;;  %v3630_v52 = vpop.f32.mrb[87].mxu1 }
 0x695   :  { %v3672_v38 = vadd.f32 %v3671_v40, %v3670_v0  ;;  %v3673_v30 = vpop.f32.mrb[114].mxu0  ;;  %v2963_v23 = vadd.f32 %v3628_v28, %v3313_v25 }
 0x696   :  { %v3674_v15 = vpop.f32.mrb[115].mxu0 }
 0x6b1   :  { %v3648_v36 = vpop.f32.mrb[88].mxu1 }
 0x6b2   :  { %v3649_v41 = vpop.f32.mrb[89].mxu1 }
 0x6b3   :  { %v3650_v33 = vadd.f32 %v3649_v41, %v3648_v36  ;;  %v3651_v35 = vpop.f32.mrb[90].mxu1 }
 0x6b4   :  { %v3652_v39 = vpop.f32.mrb[91].mxu1 }
 0x6b5   :  { %v3003_v22 = vadd.f32 %v3650_v33, %v2963_v23 }
 0x6b7   :  { %v3043_v24 = vadd.f32 %v3672_v38, %v3003_v22 }
 0x6d1   :  { %v3082_v63 = vpop.f32.mrb[92].mxu1 }
 0x6d2   :  { %v3083_v46 = vadd.f32 %v3082_v63, %v3043_v24  ;;  %v3872_v42 = vpop.f32.mrb[93].mxu1 }
 0x6d3   :  { %v3085_v48 = vpop.f32.mrb[94].mxu1 }
 0x6d4   :  { %v3088_v14 = vmax.f32 %v3083_v46, 0.0  ;;  %v3873_v10 = vpop.f32.mrb[95].mxu1 }
 0x6d6   :  { %v3089_v55 = vpack.c.bf16 %v3088_v14, %v3088_v14 }
 0x6d8   :  { %3891 = vmatmul.mubr.bf16.vlgmr.msra.gmra.mrb[116].mxu0 %v3089_v55 }
 0x7ab   :  { %v3195_v7 = vpop.f32.mrb[116].mxu0 }
 0x7ac   :  { %v3196_v49 = vadd.f32 %v3370_v5, %v3195_v7  ;;  %v3892_v44 = vpop.f32.mrb[117].mxu0 }
 0x7ad   :  { %v3198_v29 = vpop.f32.mrb[118].mxu0 }
 0x7ae   :  { %3201 = vst [vmem:[#allocation13] sm:$0xff] %v3196_v49  ;;  %v3893_v26 = vpop.f32.mrb[119].mxu0 }
 0x7af   :  { %4202 = shalt.err (!%p4199_p10)
}
 0x7b0   :  { %s4203_s13 = scalar_lea.hbm %s5641_s14, 128 }
 0x7b1   :  { %p4204_p11 = scmp.ne.s32.totalorder %s5641_s14, %s4203_s13  ;;  %p4207_p12 = scmp.lt.u32.totalorder %s4203_s13, %s5641_s14 }
 0x7b3   :  { %p4209_p13 = pnand %p4207_p12, %p4204_p11 }
 0x7b5   :  { %4212 = shalt.err (!%p4209_p13)
}
 0x7b6   :  { %3211 = dma.vmem_to_hbm [thread:$0]  %s3209_s28, 128, %s5641_s14, [#allocation4]  }
 0x7b7   :  { %4221 = dma.done.wait [#allocation4], 128  }
 0x7b8   :  { %4222 = vsyncadd [#allocation4], 4294967168 }
 0x7b9   :  { %3215 = vsyncpa [#allocation3], 1 }
 0x7ba   :  { %3216 = vsyncpa [#allocation6], 1 }
 0x7bb   :  { %3217 = vsyncpa [#allocation9], 1 }
 0x7bc   :  { %3218 = vsyncpa [#allocation12], 1 }
 0x7bd   :  { %3219 = vsyncpa [#allocation4], 1 }

</bundles_post_ra>
